<compile_context>
chip_gen: v7x
topology: tpu7x:2x2x1
jax: 0.10.0
libtpu: 0.0.40
codegen_flags: <defaults>
</compile_context>

<pallas_src>
import functools

import jax
import jax.numpy as jnp
import numpy as np
from jax import lax
from jax.experimental import pallas as pl
from jax.experimental.pallas import tpu as pltpu


# ---------------------------------------------------------------------------
# Conv2d (same padding) + fused per-channel partial BN statistics
#   input : x NHWC (N, H, W, Cin), weights flattened to (kh*kw*Cin, Cout)
#   output: y channel-major (N, Cout, Ho*Wo)  [lane-dense],
#           partial stats (N, 2, Cout) = per-sample (sum, sum-of-squares)
# ---------------------------------------------------------------------------
def _conv_stats_kernel(x_ref, w_ref, y_ref, stat_ref, *, kh, kw, ph, pw,
                       h_out, w_out):
    cin = x_ref.shape[-1]
    cout = w_ref.shape[-1]
    hw = h_out * w_out

    xv = x_ref[0]                                   # (H, W, Cin), f32
    h, w = xv.shape[0], xv.shape[1]

    # Zero-pad in VMEM values (no padded activation copy in HBM).
    if pw > 0:
        zc = jnp.zeros((h, pw, cin), xv.dtype)
        xv = jnp.concatenate([zc, xv, zc], axis=1)   # (H, Wp, Cin)
    if ph > 0:
        zr = jnp.zeros((ph, w + 2 * pw, cin), xv.dtype)
        xv = jnp.concatenate([zr, xv, zr], axis=0)   # (Hp, Wp, Cin)

    # im2col: concatenate the kh*kw shifted taps once along K, single MXU matmul.
    taps = []
    for dy in range(kh):
        for dx in range(kw):
            taps.append(xv[dy:dy + h_out, dx:dx + w_out, :].reshape(hw, cin))
    patches = jnp.concatenate(taps, axis=1) if len(taps) > 1 else taps[0]  # (HW, K)

    acc = jnp.dot(patches, w_ref[...],
                  preferred_element_type=jnp.float32)          # (HW, Cout)
    # (conv bias intentionally omitted: cancels exactly in training-mode BN)

    # Channel-major, lane-dense output: (Cout, HW) with HW on the 128-lane axis.
    y_ref[...] = acc.T.reshape(1, cout, hw).astype(y_ref.dtype)

    # Per-channel partial statistics for the fused BatchNorm.
    s1 = jnp.sum(acc, axis=0, keepdims=True)                   # (1, Cout)
    s2 = jnp.sum(acc * acc, axis=0, keepdims=True)             # (1, Cout)
    stat_ref[...] = jnp.concatenate([s1, s2], axis=0)[None, :, :]


def conv2d_with_stats(x_nhwc, w_mat, kernel_size):
    """x_nhwc: (N,H,W,Cin); w_mat: (kh*kw*Cin, Cout) in (dy, dx, cin) order."""
    kh, kw = kernel_size
    ph, pw = (kh - 1) // 2, (kw - 1) // 2
    n, h, w, cin = x_nhwc.shape
    k_dim, cout = w_mat.shape
    h_out = h + 2 * ph - kh + 1
    w_out = w + 2 * pw - kw + 1
    hw = h_out * w_out

    kernel = functools.partial(_conv_stats_kernel, kh=kh, kw=kw, ph=ph, pw=pw,
                               h_out=h_out, w_out=w_out)
    y_cm, pstats = pl.pallas_call(
        kernel,
        out_shape=(jax.ShapeDtypeStruct((n, cout, hw), jnp.float32),
                   jax.ShapeDtypeStruct((n, 2, cout), jnp.float32)),
        grid=(n,),
        in_specs=[
            pl.BlockSpec((1, h, w, cin), lambda i: (i, 0, 0, 0)),
            pl.BlockSpec((k_dim, cout), lambda i: (0, 0)),
        ],
        out_specs=(
            pl.BlockSpec((1, cout, hw), lambda i: (i, 0, 0)),
            pl.BlockSpec((1, 2, cout), lambda i: (i, 0, 0)),
        ),
        compiler_params=pltpu.CompilerParams(dimension_semantics=("parallel",)),
    )(x_nhwc, w_mat)
    return y_cm, pstats, (h_out, w_out)


# ---------------------------------------------------------------------------
# Streaming BatchNorm-apply + Dropout (channel-major, tiled over N and HW)
# ---------------------------------------------------------------------------
def _bn_dropout_kernel(*refs, p, apply_dropout):
    if apply_dropout:
        y_ref, scale_ref, shift_ref, rand_ref, o_ref = refs
    else:
        y_ref, scale_ref, shift_ref, o_ref = refs

    out = y_ref[...] * scale_ref[...] + shift_ref[...]   # (1, Cout, hw_tile)

    if apply_dropout:
        if p >= 1.0:                      # guard: p == 1 must zero everything
            out = jnp.zeros_like(out)
        else:
            keep = rand_ref[...] >= p     # P(keep) = 1 - p
            out = jnp.where(keep, out * (1.0 / (1.0 - p)), 0.0)

    o_ref[...] = out.astype(o_ref.dtype)


def _pick_hw_tile(hw, max_elems=2048):
    """Largest multiple-of-128 divisor of hw that is <= max_elems (else full)."""
    if hw <= max_elems:
        return hw
    start = max_elems - (max_elems % 128)
    for t in range(start, 0, -128):
        if hw % t == 0:
            return t
    return hw


def bn_dropout_apply(y_cm, scale, shift, rand, *, p, apply_dropout):
    """y_cm: (N, Cout, HW); scale/shift: (1, Cout, 1); rand: like y_cm or None."""
    n, cout, hw = y_cm.shape
    hw_tile = _pick_hw_tile(hw)
    n_hw = hw // hw_tile

    y_spec = pl.BlockSpec((1, cout, hw_tile), lambda i, j: (i, 0, j))
    c_spec = pl.BlockSpec((1, cout, 1), lambda i, j: (0, 0, 0))

    in_specs = [y_spec, c_spec, c_spec]
    args = [y_cm, scale, shift]
    if apply_dropout:
        in_specs.append(y_spec)
        args.append(rand)

    kernel = functools.partial(_bn_dropout_kernel, p=p,
                               apply_dropout=apply_dropout)
    return pl.pallas_call(
        kernel,
        out_shape=jax.ShapeDtypeStruct((n, cout, hw), jnp.float32),
        grid=(n, n_hw),
        in_specs=in_specs,
        out_specs=y_spec,
        compiler_params=pltpu.CompilerParams(
            dimension_semantics=("parallel", "parallel"),
            vmem_limit_bytes=32 * 1024 * 1024),
    )(*args)


# ---------------------------------------------------------------------------
# TEN forward: Conv2d -> BatchNorm2d (training batch stats) -> Dropout
# Public interface is NCHW, like the PyTorch module.
# ---------------------------------------------------------------------------
def ten_forward(x_nchw, params, *, kernel_size, dropout, training=True, seed=0):
    kh, kw = kernel_size
    x_nhwc = jnp.transpose(x_nchw, (0, 2, 3, 1))
    cin = x_nhwc.shape[-1]
    cout = params["w"].shape[-1]
    w_mat = params["w"].reshape(kh * kw * cin, cout)       # HWIO -> (K, Cout)

    y_cm, pstats, (h_out, w_out) = conv2d_with_stats(x_nhwc, w_mat, kernel_size)
    n = y_cm.shape[0]
    hw = h_out * w_out
    count = n * hw

    # Finalize BN statistics from the per-sample partials (tiny reduction).
    s = jnp.sum(pstats, axis=0)                             # (2, Cout)
    mean = s[0] / count
    var = jnp.maximum(s[1] / count - mean * mean, 0.0)      # biased, like PyTorch
    inv = lax.rsqrt(var + 1e-5)
    scale = (params["gamma"] * inv).reshape(1, cout, 1)
    shift = (params["beta"] - params["gamma"] * mean * inv).reshape(1, cout, 1)
    # TODO(synk): running_mean / running_var buffer updates are not tracked here.

    p = float(dropout)
    apply_dropout = bool(training) and p > 0.0
    rand = None
    if apply_dropout:
        rand = jax.random.uniform(jax.random.PRNGKey(seed), (n, cout, hw),
                                  jnp.float32)

    z = bn_dropout_apply(y_cm, scale, shift, rand, p=p,
                         apply_dropout=apply_dropout)       # (N, Cout, HW)
    return z.reshape(n, cout, h_out, w_out)                 # already NCHW


def init_params(key, in_channels, out_channels, kernel_size):
    kh, kw = kernel_size
    k1, k2, k3, k4 = jax.random.split(key, 4)
    fan_in = in_channels * kh * kw
    bound = 1.0 / np.sqrt(fan_in)
    w = jax.random.uniform(k1, (kh, kw, in_channels, out_channels),
                           jnp.float32, -bound, bound)       # HWIO
    b = jax.random.uniform(k2, (out_channels,), jnp.float32, -bound, bound)
    gamma = 1.0 + 0.1 * jax.random.normal(k3, (out_channels,), jnp.float32)
    beta = 0.1 * jax.random.normal(k4, (out_channels,), jnp.float32)
    return {"w": w, "b": b, "gamma": gamma, "beta": beta}


# ---------------------------------------------------------------------------
# Pure-JAX reference (conv + bias + training-mode BN, no dropout).
# The bias is included here and omitted in the kernel: it cancels exactly in
# (y - mean), so both must agree.
# ---------------------------------------------------------------------------
def reference_no_dropout(x_nchw, params, kernel_size):
    kh, kw = kernel_size
    ph, pw = (kh - 1) // 2, (kw - 1) // 2
    x_nhwc = jnp.transpose(x_nchw, (0, 2, 3, 1))
    y = lax.conv_general_dilated(
        x_nhwc, params["w"], window_strides=(1, 1),
        padding=[(ph, ph), (pw, pw)],
        dimension_numbers=("NHWC", "HWIO", "NHWC"))
    y = y + params["b"][None, None, None, :]
    mean = y.mean(axis=(0, 1, 2))
    var = y.var(axis=(0, 1, 2))   # biased
    z = (y - mean) * lax.rsqrt(var + 1e-5) * params["gamma"] + params["beta"]
    return jnp.transpose(z, (0, 3, 1, 2))


if __name__ == "__main__":
    key = jax.random.PRNGKey(0)
    kx, kp = jax.random.split(key)

    N, Cin, H, W = 2, 4, 16, 16
    Cout = 8
    kernel_size = (3, 3)
    dropout = 0.1

    x = jax.random.normal(kx, (N, Cin, H, W), jnp.float32)
    params = init_params(kp, Cin, Cout, kernel_size)

    # 1) correctness vs pure-JAX reference (dropout disabled, training-mode BN)
    out_nodrop = ten_forward(x, params, kernel_size=kernel_size, dropout=0.0,
                             training=True, seed=0)
    out_nodrop = jax.block_until_ready(out_nodrop)
    ref = jax.block_until_ready(reference_no_dropout(x, params, kernel_size))
    np.testing.assert_allclose(np.asarray(out_nodrop), np.asarray(ref),
                               rtol=1e-4, atol=1e-4)

    # 2) full forward (conv + BN + dropout)
    out = ten_forward(x, params, kernel_size=kernel_size, dropout=dropout,
                      training=True, seed=123)
    out = jax.block_until_ready(out)
    assert out.shape == (N, Cout, H, W)
    zero_frac = float(np.mean(np.asarray(out) == 0.0))
    assert 0.02 < zero_frac < 0.30, f"dropout zero fraction off: {zero_frac}"

    print("KERNEL_OK")
</pallas_src>

<mosaic_0001>
module attributes {stable_mosaic.version = 11 : i64} {
  func.func @_conv_stats_kernel(%arg0: i32, %arg1: memref<1x16x16x4xf32, #tpu.memory_space<vmem>>, %arg2: memref<36x8xf32, #tpu.memory_space<vmem>>, %arg3: memref<1x8x256xf32, #tpu.memory_space<vmem>>, %arg4: memref<1x2x8xf32, #tpu.memory_space<vmem>>) attributes {dimension_semantics = [#tpu.dimension_semantics<parallel>], iteration_bounds = array<i64: 2>, scalar_prefetch = 0 : i64, scratch_operands = 0 : i64, tpu.core_type = #tpu.core_type<tc>, window_params = [{transform_indices = @transform_0, window_bounds = array<i64: 1, 16, 16, 4>}, {pipeline_mode = #tpu.pipeline_mode<synchronous>, transform_indices = @transform_1, window_bounds = array<i64: 36, 8>}, {transform_indices = @transform_2, window_bounds = array<i64: 1, 8, 256>}, {transform_indices = @transform_3, window_bounds = array<i64: 1, 2, 8>}]} {
    %c0 = arith.constant 0 : index
    %c0_0 = arith.constant 0 : index
    %c0_1 = arith.constant 0 : index
    %c0_2 = arith.constant 0 : index
    %0 = vector.load %arg1[%c0, %c0_0, %c0_1, %c0_2] : memref<1x16x16x4xf32, #tpu.memory_space<vmem>>, vector<1x16x16x4xf32>
    %1 = vector.shape_cast %0 : vector<1x16x16x4xf32> to vector<16x16x4xf32>
    %cst = arith.constant 0.000000e+00 : f32
    %2 = vector.broadcast %cst : f32 to vector<16x1x4xf32>
    %3 = tpu.concatenate %2, %1, %2 in 1 : vector<16x1x4xf32>, vector<16x16x4xf32>, vector<16x1x4xf32> -> vector<16x18x4xf32>
    %cst_3 = arith.constant 0.000000e+00 : f32
    %4 = vector.broadcast %cst_3 : f32 to vector<1x18x4xf32>
    %5 = tpu.concatenate %4, %3, %4 in 0 : vector<1x18x4xf32>, vector<16x18x4xf32>, vector<1x18x4xf32> -> vector<18x18x4xf32>
    %6 = vector.extract_strided_slice %5 {offsets = [0, 0, 0], sizes = [16, 16, 4], strides = [1, 1, 1]} : vector<18x18x4xf32> to vector<16x16x4xf32>
    %7 = vector.shape_cast %6 : vector<16x16x4xf32> to vector<256x4xf32>
    %8 = vector.extract_strided_slice %5 {offsets = [0, 1, 0], sizes = [16, 16, 4], strides = [1, 1, 1]} : vector<18x18x4xf32> to vector<16x16x4xf32>
    %9 = vector.shape_cast %8 : vector<16x16x4xf32> to vector<256x4xf32>
    %10 = vector.extract_strided_slice %5 {offsets = [0, 2, 0], sizes = [16, 16, 4], strides = [1, 1, 1]} : vector<18x18x4xf32> to vector<16x16x4xf32>
    %11 = vector.shape_cast %10 : vector<16x16x4xf32> to vector<256x4xf32>
    %12 = vector.extract_strided_slice %5 {offsets = [1, 0, 0], sizes = [16, 16, 4], strides = [1, 1, 1]} : vector<18x18x4xf32> to vector<16x16x4xf32>
    %13 = vector.shape_cast %12 : vector<16x16x4xf32> to vector<256x4xf32>
    %14 = vector.extract_strided_slice %5 {offsets = [1, 1, 0], sizes = [16, 16, 4], strides = [1, 1, 1]} : vector<18x18x4xf32> to vector<16x16x4xf32>
    %15 = vector.shape_cast %14 : vector<16x16x4xf32> to vector<256x4xf32>
    %16 = vector.extract_strided_slice %5 {offsets = [1, 2, 0], sizes = [16, 16, 4], strides = [1, 1, 1]} : vector<18x18x4xf32> to vector<16x16x4xf32>
    %17 = vector.shape_cast %16 : vector<16x16x4xf32> to vector<256x4xf32>
    %18 = vector.extract_strided_slice %5 {offsets = [2, 0, 0], sizes = [16, 16, 4], strides = [1, 1, 1]} : vector<18x18x4xf32> to vector<16x16x4xf32>
    %19 = vector.shape_cast %18 : vector<16x16x4xf32> to vector<256x4xf32>
    %20 = vector.extract_strided_slice %5 {offsets = [2, 1, 0], sizes = [16, 16, 4], strides = [1, 1, 1]} : vector<18x18x4xf32> to vector<16x16x4xf32>
    %21 = vector.shape_cast %20 : vector<16x16x4xf32> to vector<256x4xf32>
    %22 = vector.extract_strided_slice %5 {offsets = [2, 2, 0], sizes = [16, 16, 4], strides = [1, 1, 1]} : vector<18x18x4xf32> to vector<16x16x4xf32>
    %23 = vector.shape_cast %22 : vector<16x16x4xf32> to vector<256x4xf32>
    %24 = tpu.concatenate %7, %9, %11, %13, %15, %17, %19, %21, %23 in 1 : vector<256x4xf32>, vector<256x4xf32>, vector<256x4xf32>, vector<256x4xf32>, vector<256x4xf32>, vector<256x4xf32>, vector<256x4xf32>, vector<256x4xf32>, vector<256x4xf32> -> vector<256x36xf32>
    %c0_4 = arith.constant 0 : index
    %c0_5 = arith.constant 0 : index
    %25 = vector.load %arg2[%c0_4, %c0_5] : memref<36x8xf32, #tpu.memory_space<vmem>>, vector<36x8xf32>
    %cst_6 = arith.constant dense<0.000000e+00> : vector<256x8xf32>
    %26 = tpu.matmul %24, %25, %cst_6 {dimension_numbers = #tpu.dot_dimension_numbers<[1], [0], [0], [1], [0, 0, 1, 1], [], []>} : vector<256x36xf32>, vector<36x8xf32>, vector<256x8xf32> -> vector<256x8xf32>
    %27 = tpu.transpose %26, [1, 0] : vector<256x8xf32> -> vector<8x256xf32>
    %28 = vector.shape_cast %27 : vector<8x256xf32> to vector<1x8x256xf32>
    %c0_7 = arith.constant 0 : index
    %c0_8 = arith.constant 0 : index
    %c0_9 = arith.constant 0 : index
    %29 = vector.load %arg3[%c0_7, %c0_8, %c0_9] : memref<1x8x256xf32, #tpu.memory_space<vmem>>, vector<1x8x256xf32>
    tpu.vector_store %arg3[%c0_7, %c0_8, %c0_9], %28 {strides = array<i32>} : memref<1x8x256xf32, #tpu.memory_space<vmem>>, vector<1x8x256xf32>,
    %cst_10 = arith.constant dense<0.000000e+00> : vector<8xf32>
    %30 = vector.multi_reduction <add>, %26, %cst_10 [0] : vector<256x8xf32> to vector<8xf32>
    %31 = vector.shape_cast %30 : vector<8xf32> to vector<1x8xf32>
    %32 = arith.mulf %26, %26 : vector<256x8xf32>
    %cst_11 = arith.constant dense<0.000000e+00> : vector<8xf32>
    %33 = vector.multi_reduction <add>, %32, %cst_11 [0] : vector<256x8xf32> to vector<8xf32>
    %34 = vector.shape_cast %33 : vector<8xf32> to vector<1x8xf32>
    %35 = tpu.concatenate %31, %34 in 0 : vector<1x8xf32>, vector<1x8xf32> -> vector<2x8xf32>
    %36 = vector.shape_cast %35 : vector<2x8xf32> to vector<1x2x8xf32>
    %c0_12 = arith.constant 0 : index
    %c0_13 = arith.constant 0 : index
    %c0_14 = arith.constant 0 : index
    %37 = vector.load %arg4[%c0_12, %c0_13, %c0_14] : memref<1x2x8xf32, #tpu.memory_space<vmem>>, vector<1x2x8xf32>
    tpu.vector_store %arg4[%c0_12, %c0_13, %c0_14], %36 {strides = array<i32>} : memref<1x2x8xf32, #tpu.memory_space<vmem>>, vector<1x2x8xf32>,
    return
  }
  func.func @transform_0(%arg0: i32) -> (i32, i32, i32, i32) {
    %c0_i32 = arith.constant 0 : i32
    %c0_i32_0 = arith.constant 0 : i32
    %c0_i32_1 = arith.constant 0 : i32
    %c0_i32_2 = arith.constant 0 : i32
    return %arg0, %c0_i32, %c0_i32_0, %c0_i32_1 : i32, i32, i32, i32
  }
  func.func @transform_1(%arg0: i32) -> (i32, i32) {
    %c0_i32 = arith.constant 0 : i32
    %c0_i32_0 = arith.constant 0 : i32
    %c0_i32_1 = arith.constant 0 : i32
    return %c0_i32, %c0_i32_0 : i32, i32
  }
  func.func @transform_2(%arg0: i32) -> (i32, i32, i32) {
    %c0_i32 = arith.constant 0 : i32
    %c0_i32_0 = arith.constant 0 : i32
    %c0_i32_1 = arith.constant 0 : i32
    return %arg0, %c0_i32, %c0_i32_0 : i32, i32, i32
  }
  func.func @transform_3(%arg0: i32) -> (i32, i32, i32) {
    %c0_i32 = arith.constant 0 : i32
    %c0_i32_0 = arith.constant 0 : i32
    %c0_i32_1 = arith.constant 0 : i32
    return %arg0, %c0_i32, %c0_i32_0 : i32, i32, i32
  }
}

</mosaic_0001>

<bundles_post_ra>
// kernel: tpu_custom_call.1
= control target key start
LH: loop header
LB: loop body
LE: loop exit
PB: predicated region body
PF: predicated region fallthrough
CT: control target
= control target key end

     0   :  { %9 = vsyncpa [#allocation3], 0  ;;  %s4506_s0 = inlined_call_operand.vmem [shape: f32[2,16,16,4], index: 0, kind: input, shape index: {}]   ;;  %s4507_s1 = inlined_call_operand.vmem [shape: f32[36,8], index: 1, kind: input, shape index: {}]   ;;  %s4508_s2 = inlined_call_operand.hbm [shape: f32[2,8,256], index: 2, kind: output, shape index: {0}]   ;;  %s4509_s3 = inlined_call_operand.hbm [shape: f32[2,2,8], index: 3, kind: output, shape index: {1}]  }
   0x1   :  { %11 = vsyncpa [#allocation3 + $0x1], 0 }
   0x2   :  { %12 = vsyncpa [#allocation5], 0 }
   0x3   :  { %14 = vsyncpa [#allocation5 + $0x1], 0  ;;  %s2619_s12 = smov 0   ;;  %s2621_s13 = smov 0  }
   0x4   :  { %s2623_s14 = smov 0   ;;  %s2625_s15 = smov 0  }
   0x5 LB: > { %s2640_s16 = sadd.s32 4294967295, %s2586_s15   ;;  %s2280_s17 = sadd.s32 4294967294, %s2586_s15   ;;  %s2586_s15 = sphi %s2625_s15, %s4920_s15   ;;  %s2582_s14 = sphi %s2623_s14, %s4919_s14   ;;  %s2578_s13 = sphi %s2621_s13, %s4918_s13   ;;  %s2574_s12 = sphi %s2619_s12, %s4917_s12  }
   0x6   : > { %s2644_s18 = sadd.s32 1, %s2586_s15   ;;  %s74_s19 = sadd.s32 1, %s2582_s14 }
   0x7   : > { %s71_s20 = ssub.s32 %s2586_s15, %s2644_s18  ;;  %p84_p0 = scmp.ne.s32.totalorder %s2582_s14, %s2578_s13 }
   0x8   : > { %p72_p1 = scmp.eq.s32.totalorder %s71_s20, 0  ;;  %p85_p2 = scmp.eq.s32.totalorder %s2640_s16, 1 }
   0x9   : > { %p90_p3 = scmp.ne.s32.totalorder %s2578_s13, %s2574_s12  ;;  %p91_p4 = scmp.eq.s32.totalorder %s2280_s17, 1 }
   0xa   : > { %s2655_s21 = scalar_select %p72_p1, %s2582_s14, %s74_s19  }
   0xb   : > { %p2657_p5 = por %p85_p2, %p84_p0  ;;  %p2661_p6 = por %p91_p4, %p90_p3 }
   0xc   : > { %p2283_p7 = scmp.ge.s32.totalorder %s2586_s15, 1  ;;  %p146_p8 = scmp.lt.s32.totalorder %s2586_s15, 3 }
   0xe   : > { %p147_p9 = pnand %p2283_p7, %p146_p8 }
  0x10   : > { %150 = sbr.rel (%p147_p9) target bundleno = 950 (0x3b6), region = 28 }
  0x17   : > { %p175_p10 = scmp.lt.s32.totalorder %s2640_s16, 1  ;;  %v4510_v0 = vmov 0.0   ;;  %s2589_s25 = smov 4   ;;  %vm244_vm0 = vcmask 1040384   ;;  %vm403_vm1 = vcmask 1046528   ;;  %vm481_vm2 = vcmask 1045504  }
  0x18   : > { %v2669_v1 = vrot.slane %v4510_v0, 1  ;;  %s2590_s30 = smov 8   ;;  %s2591_s4 = smov 12   ;;  %vm1688_vm3 = vcmask 1043456   ;;  %vm1324_vm4 = vcmask 31744   ;;  %vm1356_vm5 = vcmask 64512  }
  0x19   : > { %s176_s24 = scalar_select %p175_p10, %s2640_s16, 1  ;;  %vm1388_vm6 = vcmask 97280   ;;  %vm1421_vm7 = vcmask 130048   ;;  %vm1454_vm8 = vcmask 162816   ;;  %vm1487_vm9 = vcmask 195584  }
  0x1a   : > { %4628 = vst [vmem:[#allocation8_spill] sm:$0xff] %v2669_v1  ;;  %571 = vrot.lane.b32.xlu0 %v2669_v1, %s2589_s25  ;;  %s2592_s5 = smov 16   ;;  %s2593_s20 = smov 20   ;;  %vm1520_vm10 = vcmask 228352   ;;  %vm1553_vm11 = vcmask 261120   ;;  %vm1591_vm12 = vcmask 293888  }
  0x1b   : > { %s2328_s26 = sshll.u32 %s176_s24, 8  ;;  %s2595_s27 = smov 28   ;;  %vm2154_vm13 = vcmask 58368  }
  0x1c   : > { %s2677_s29 = scalar_lea.vmem %s4506_s0, %s2328_s26  ;;  %s2594_s26 = smov 24  }
  0x1d   : > { %v180_v2 = vld [vmem:[%s2677_s29] sm:$0xff]  ;;  %v181_v3 = vld [vmem:[%s2677_s29 + $0x8] sm:$0xff]  ;;  %v182_v4 = vld [vmem:[%s2677_s29 + $0x10] sm:$0xff]  ;;  %s2596_s28 = smov 32   ;;  %s2325_s6 = sshll.u32 %s2640_s16, 5 }
  0x1e   : > { %v245_v5 = vrot.slane %v180_v2, 7  ;;  %v246_v6 = vrot.slane %v181_v3, 7  ;;  %v183_v7 = vld [vmem:[%s2677_s29 + $0x18] sm:$0xff]  ;;  %v248_v8 = vrot.slane %v182_v4, 7  ;;  %v184_v9 = vld [vmem:[%s2677_s29 + $0x20] sm:$0xff]  ;;  %v185_v10 = vld [vmem:[%s2677_s29 + $0x28] sm:$0xff]  ;;  %s4430_s11 = scalar_lea.hbm %s4509_s3, %s2325_s6 }
  0x1f   : > { %v249_v11 = vrot.slane %v183_v7, 7  ;;  %v251_v12 = vrot.slane %v184_v9, 7  ;;  %v252_v13 = vrot.slane %v185_v10, 7  ;;  %v186_v26 = vld [vmem:[%s2677_s29 + $0x30] sm:$0xff]  ;;  %v187_v27 = vld [vmem:[%s2677_s29 + $0x38] sm:$0xff]  ;;  %v188_v32 = vld [vmem:[%s2677_s29 + $0x40] sm:$0xff] }
  0x20   : > { %v2686_v14 = vsel %vm244_vm0, %v245_v5, %v246_v6  ;;  %v2689_v15 = vsel %vm244_vm0, %v246_v6, 0.0  ;;  %v2692_v16 = vsel %vm244_vm0, 0.0, %v245_v5  ;;  %v2695_v17 = vsel %vm244_vm0, 0.0, %v248_v8  ;;  %v189_v33 = vld [vmem:[%s2677_s29 + $0x48] sm:$0xff]  ;;  %v190_v42 = vld [vmem:[%s2677_s29 + $0x50] sm:$0xff]  ;;  %v191_v49 = vld [vmem:[%s2677_s29 + $0x58] sm:$0xff] }
  0x21   : > { %v407_v18 = vrot.slane %v2686_v14, 1  ;;  %v409_v19 = vrot.slane %v2689_v15, 1  ;;  %v406_v20 = vrot.slane %v2692_v16, 1  ;;  %v2701_v21 = vsel %vm244_vm0, %v248_v8, %v249_v11  ;;  %v192_v58 = vld [vmem:[%s2677_s29 + $0x60] sm:$0xff]  ;;  %v193_v60 = vld [vmem:[%s2677_s29 + $0x68] sm:$0xff]  ;;  %v194_v3 = vld [vmem:[%s2677_s29 + $0x70] sm:$0xff] }
  0x22   : > { %v411_v22 = vrot.slane %v2695_v17, 1  ;;  %v412_v23 = vrot.slane %v2701_v21, 1  ;;  %v2706_v24 = vsel %vm244_vm0, %v249_v11, 0.0  ;;  %v2709_v25 = vsel %vm244_vm0, %v251_v12, %v252_v13  ;;  %v195_v8 = vld [vmem:[%s2677_s29 + $0x78] sm:$0xff] }
  0x23   : > { %v2714_v28 = vsel %vm403_vm1, %v407_v18, %v409_v19  ;;  %v2717_v29 = vsel %vm403_vm1, %v406_v20, %v407_v18  ;;  %v414_v30 = vrot.slane %v2706_v24, 1  ;;  %v2721_v31 = vsel %vm244_vm0, 0.0, %v251_v12 }
  0x24   : > { %575 = vrot.lane.b32.xlu1 %v2714_v28, %s2589_s25  ;;  %573 = vrot.lane.b32.xlu0 %v2717_v29, %s2589_s25  ;;  %v2730_v34 = vsel %vm403_vm1, %v411_v22, %v412_v23  ;;  %v416_v35 = vrot.slane %v2721_v31, 1  ;;  %v417_v36 = vrot.slane %v2709_v25, 1  ;;  %v2735_v37 = vsel %vm244_vm0, %v252_v13, 0.0  ;;  %v196_v22 = vld [vmem:[%s2677_s29 + $0x80] sm:$0xff] }
  0x25   : > { %v2738_v38 = vsel %vm403_vm1, %v412_v23, %v414_v30  ;;  %v419_v39 = vrot.slane %v2735_v37, 1  ;;  %v254_v40 = vrot.slane %v186_v26, 7  ;;  %v255_v41 = vrot.slane %v187_v27, 7 }
  0x26   : > { %v257_v43 = vrot.slane %v188_v32, 7  ;;  %v258_v44 = vrot.slane %v189_v33, 7  ;;  %v2743_v45 = vsel %vm403_vm1, %v416_v35, %v417_v36  ;;  %v260_v53 = vrot.slane %v190_v42, 7  ;;  %v197_v32 = vld [vmem:[%s2677_s29 + $0x88] sm:$0xff] }
  0x27   : > { %v2746_v46 = vsel %vm244_vm0, %v254_v40, %v255_v41  ;;  %v2749_v47 = vsel %vm244_vm0, 0.0, %v254_v40  ;;  %v2752_v48 = vsel %vm244_vm0, %v255_v41, 0.0  ;;  %v2760_v50 = vsel %vm403_vm1, %v417_v36, %v419_v39 }
  0x28   : > { %577 = vrot.lane.b32.xlu1 %v2730_v34, %s2589_s25  ;;  %579 = vrot.lane.b32.xlu0 %v2738_v38, %s2589_s25  ;;  %v421_v51 = vrot.slane %v2749_v47, 1  ;;  %v2764_v52 = vsel %vm244_vm0, %v257_v43, %v258_v44  ;;  %v422_v54 = vrot.slane %v2746_v46, 1  ;;  %v424_v55 = vrot.slane %v2752_v48, 1 }
  0x29   : > { %4629 = vst [vmem:[#allocation9_spill] sm:$0xff] %v2764_v52  ;;  %v2769_v56 = vsel %vm244_vm0, 0.0, %v257_v43  ;;  %v2772_v57 = vsel %vm244_vm0, %v258_v44, 0.0  ;;  %v261_v59 = vrot.slane %v191_v49, 7  ;;  %v427_v62 = vrot.slane %v2764_v52, 1 }
  0x2a   : > { %4630 = vst [vmem:[#allocation10_spill] sm:$0xff] %v2769_v56  ;;  %v426_v61 = vrot.slane %v2769_v56, 1  ;;  %v429_v63 = vrot.slane %v2772_v57, 1  ;;  %v263_v2 = vrot.slane %v192_v58, 7  ;;  %v2785_v4 = vsel %vm403_vm1, %v421_v51, %v422_v54  ;;  %v198_v51 = vld [vmem:[%s2677_s29 + $0x90] sm:$0xff] }
  0x2b   : > { %v2788_v5 = vsel %vm403_vm1, %v422_v54, %v424_v55  ;;  %v2791_v6 = vsel %vm244_vm0, 0.0, %v260_v53  ;;  %v264_v7 = vrot.slane %v193_v60, 7  ;;  %v2795_v9 = vsel %vm244_vm0, %v260_v53, %v261_v59  ;;  %v199_v53 = vld [vmem:[%s2677_s29 + $0x98] sm:$0xff] }
  0x2c   : > { %581 = vrot.lane.b32.xlu1 %v2743_v45, %s2589_s25  ;;  %583 = vrot.lane.b32.xlu0 %v2760_v50, %s2589_s25  ;;  %4631 = vst [vmem:[#allocation11_spill] sm:$0xff] %v2791_v6  ;;  %4632 = vst [vmem:[#allocation12_spill] sm:$0xff] %v2795_v9  ;;  %v2798_v10 = vsel %vm244_vm0, %v261_v59, 0.0  ;;  %v2801_v11 = vsel %vm403_vm1, %v426_v61, %v427_v62  ;;  %v266_v12 = vrot.slane %v194_v3, 7  ;;  %v431_v18 = vrot.slane %v2791_v6, 1 }
  0x2d   : > { %4633 = vst [vmem:[#allocation13_spill] sm:$0xff] %v2801_v11  ;;  %v2808_v13 = vsel %vm403_vm1, %v427_v62, %v429_v63  ;;  %v2812_v19 = vsel %vm244_vm0, 0.0, %v263_v2  ;;  %v267_v20 = vrot.slane %v195_v8, 7  ;;  %v432_v23 = vrot.slane %v2795_v9, 1  ;;  %v201_v8 = vld [vmem:[%s2677_s29 + $0xa8] sm:$0xff] }
  0x2e   : > { %4634 = vst [vmem:[#allocation14_spill] sm:$0xff] %v2808_v13  ;;  %4635 = vst [vmem:[#allocation15_spill] sm:$0xff] %v2812_v19  ;;  %v434_v26 = vrot.slane %v2798_v10, 1  ;;  %v2818_v27 = vsel %vm244_vm0, %v263_v2, %v264_v7  ;;  %v2821_v30 = vsel %vm244_vm0, %v264_v7, 0.0  ;;  %v436_v33 = vrot.slane %v2812_v19, 1  ;;  %v200_v7 = vld [vmem:[%s2677_s29 + $0xa0] sm:$0xff] }
  0x2f   : > { %4636 = vst [vmem:[#allocation16_spill] sm:$0xff] %v2818_v27  ;;  %v2826_v35 = vsel %vm244_vm0, 0.0, %v266_v12  ;;  %v269_v36 = vrot.slane %v196_v22, 7  ;;  %v437_v39 = vrot.slane %v2818_v27, 1  ;;  %v439_v40 = vrot.slane %v2821_v30, 1 }
  0x30   : > { %585 = vrot.lane.b32.xlu1 %v2785_v4, %s2589_s25  ;;  %587 = vrot.lane.b32.xlu0 %v2788_v5, %s2589_s25  ;;  %v2835_v41 = vsel %vm244_vm0, %v266_v12, %v267_v20  ;;  %v270_v42 = vrot.slane %v197_v32, 7  ;;  %v2838_v43 = vsel %vm403_vm1, %v431_v18, %v432_v23  ;;  %v2841_v44 = vsel %vm403_vm1, %v432_v23, %v434_v26  ;;  %v202_v26 = vld [vmem:[%s2677_s29 + $0xb0] sm:$0xff] }
  0x31   : > { %4637 = vst [vmem:[#allocation17_spill] sm:$0xff] %v2838_v43  ;;  %4638 = vst [vmem:[#allocation18_spill] sm:$0xff] %v2841_v44  ;;  %v2844_v49 = vsel %vm244_vm0, %v267_v20, 0.0  ;;  %v441_v54 = vrot.slane %v2826_v35, 1  ;;  %v442_v55 = vrot.slane %v2835_v41, 1  ;;  %v2855_v58 = vsel %vm403_vm1, %v436_v33, %v437_v39 }
  0x32   : > { %4639 = vst [vmem:[#allocation19_spill] sm:$0xff] %v2855_v58  ;;  %v2858_v59 = vsel %vm403_vm1, %v437_v39, %v439_v40  ;;  %v2861_v60 = vsel %vm244_vm0, %v269_v36, %v270_v42  ;;  %v2864_v61 = vsel %vm244_vm0, 0.0, %v269_v36  ;;  %v444_v62 = vrot.slane %v2844_v49, 1 }
  0x33   : > { %4640 = vst [vmem:[#allocation20_spill] sm:$0xff] %v2858_v59  ;;  %4641 = vst [vmem:[#allocation21_spill] sm:$0xff] %v2861_v60  ;;  %v2868_v63 = vsel %vm244_vm0, %v270_v42, 0.0  ;;  %v272_v2 = vrot.slane %v198_v51, 7  ;;  %v273_v3 = vrot.slane %v199_v53, 7  ;;  %v446_v12 = vrot.slane %v2864_v61, 1 }
  0x34   : > { %589 = vrot.lane.b32.xlu1 %v2801_v11, %s2589_s25  ;;  %591 = vrot.lane.b32.xlu0 %v2808_v13, %s2589_s25  ;;  %4642 = vst [vmem:[#allocation22_spill] sm:$0xff] %v2864_v61  ;;  %v447_v18 = vrot.slane %v2861_v60, 1  ;;  %v2879_v20 = vsel %vm403_vm1, %v441_v54, %v442_v55  ;;  %v449_v22 = vrot.slane %v2868_v63, 1  ;;  %v275_v23 = vrot.slane %v200_v7, 7  ;;  %v203_v42 = vld [vmem:[%s2677_s29 + $0xb8] sm:$0xff] }
  0x35   : > { %4643 = vst [vmem:[#allocation23_spill] sm:$0xff] %v2879_v20  ;;  %v2884_v32 = vsel %vm403_vm1, %v442_v55, %v444_v62  ;;  %v2887_v33 = vsel %vm244_vm0, %v272_v2, %v273_v3  ;;  %v2890_v36 = vsel %vm244_vm0, 0.0, %v272_v2  ;;  %v276_v39 = vrot.slane %v201_v8, 7 }
  0x36   : > { %4644 = vst [vmem:[#allocation24_spill] sm:$0xff] %v2884_v32  ;;  %4645 = vst [vmem:[#allocation25_spill] sm:$0xff] %v2887_v33  ;;  %v2893_v40 = vsel %vm244_vm0, %v273_v3, 0.0  ;;  %v2897_v51 = vsel %vm403_vm1, %v446_v12, %v447_v18  ;;  %v278_v53 = vrot.slane %v202_v26, 7  ;;  %v2904_v54 = vsel %vm403_vm1, %v447_v18, %v449_v22  ;;  %v204_v18 = vld [vmem:[%s2677_s29 + $0xc0] sm:$0xff]  ;;  %v205_v26 = vld [vmem:[%s2677_s29 + $0xc8] sm:$0xff] }
  0x37   : > { %4646 = vst [vmem:[#allocation26_spill] sm:$0xff] %v2890_v36  ;;  %4647 = vst [vmem:[#allocation27_spill] sm:$0xff] %v2897_v51  ;;  %v451_v55 = vrot.slane %v2890_v36, 1  ;;  %v452_v62 = vrot.slane %v2887_v33, 1  ;;  %v2909_v2 = vsel %vm244_vm0, 0.0, %v275_v23  ;;  %v454_v3 = vrot.slane %v2893_v40, 1 }
  0x38   : > { %593 = vrot.lane.b32.xlu1 %v2838_v43, %s2589_s25  ;;  %595 = vrot.lane.b32.xlu0 %v2841_v44, %s2589_s25  ;;  %4648 = vst [vmem:[#allocation28_spill] sm:$0xff] %v2904_v54  ;;  %4649 = vst [vmem:[#allocation29_spill] sm:$0xff] %v2909_v2  ;;  %v2913_v7 = vsel %vm244_vm0, %v275_v23, %v276_v39  ;;  %v2916_v8 = vsel %vm244_vm0, %v276_v39, 0.0  ;;  %v279_v12 = vrot.slane %v203_v42, 7  ;;  %v456_v22 = vrot.slane %v2909_v2, 1  ;;  %v209_v43 = vld [vmem:[%s2677_s29 + $0xe8] sm:$0xff] }
  0x39   : > { %4650 = vst [vmem:[#allocation30_spill] sm:$0xff] %v2913_v7  ;;  %v2926_v0 = vsel %vm403_vm1, %v451_v55, %v452_v62  ;;  %v457_v23 = vrot.slane %v2913_v7, 1  ;;  %v459_v39 = vrot.slane %v2916_v8, 1  ;;  %v2931_v42 = vsel %vm244_vm0, 0.0, %v278_v53 }
  0x3a   : > { %4651 = vst [vmem:[#allocation31_spill] sm:$0xff] %v2926_v0  ;;  %v2934_v1 = vsel %vm403_vm1, %v452_v62, %v454_v3  ;;  %v282_v55 = vrot.slane %v205_v26, 7  ;;  %v288_v13 = vrot.slane %v209_v43, 7 }
  0x3b   : > { %4652 = vst [vmem:[#allocation32_spill] sm:$0xff] %v2934_v1  ;;  %v2949_v62 = vsel %vm403_vm1, %v456_v22, %v457_v23 }
  0x3c   : > { %597 = vrot.lane.b32.xlu1 %v2855_v58, %s2589_s25  ;;  %599 = vrot.lane.b32.xlu0 %v2858_v59, %s2589_s25  ;;  %v207_v59 = vld [vmem:[%s2677_s29 + $0xd8] sm:$0xff]  ;;  %4653 = vst [vmem:[#allocation33_spill] sm:$0xff] %v2949_v62  ;;  %v2964_v22 = vsel %vm244_vm0, %v282_v55, 0.0 }
  0x40   : > { %601 = vrot.lane.b32.xlu1 %v2879_v20, %s2589_s25  ;;  %603 = vrot.lane.b32.xlu0 %v2884_v32, %s2589_s25  ;;  %v2937_v32 = vsel %vm244_vm0, %v278_v53, %v279_v12  ;;  %v206_v20 = vld [vmem:[%s2677_s29 + $0xd0] sm:$0xff]  ;;  %v461_v53 = vrot.slane %v2931_v42, 1 }
  0x41   : > { %v462_v3 = vrot.slane %v2937_v32, 1  ;;  %v284_v58 = vrot.slane %v206_v20, 7 }
  0x44   : > { %605 = vrot.lane.b32.xlu1 %v2897_v51, %s2589_s25  ;;  %607 = vrot.lane.b32.xlu0 %v2904_v54, %s2589_s25  ;;  %v2940_v51 = vsel %vm244_vm0, %v279_v12, 0.0  ;;  %v281_v54 = vrot.slane %v204_v18, 7  ;;  %v2955_v18 = vsel %vm403_vm1, %v457_v23, %v459_v39  ;;  %v2973_v23 = vsel %vm403_vm1, %v461_v53, %v462_v3 }
  0x45   : > { %v464_v12 = vrot.slane %v2940_v51, 1  ;;  %4654 = vst [vmem:[#allocation34_spill] sm:$0xff] %v2955_v18  ;;  %4657 = vst [vmem:[#allocation37_spill] sm:$0xff] %v2973_v23  ;;  %v469_v39 = vrot.slane %v2964_v22, 1 }
  0x46   : > { %v2958_v26 = vsel %vm244_vm0, 0.0, %v281_v54  ;;  %v2961_v44 = vsel %vm244_vm0, %v281_v54, %v282_v55 }
  0x47   : > { %4655 = vst [vmem:[#allocation35_spill] sm:$0xff] %v2958_v26  ;;  %4656 = vst [vmem:[#allocation36_spill] sm:$0xff] %v2961_v44  ;;  %v2976_v20 = vsel %vm403_vm1, %v462_v3, %v464_v12  ;;  %v467_v54 = vrot.slane %v2961_v44, 1 }
  0x48   : > { %609 = vrot.lane.b32.xlu1 %v2926_v0, %s2589_s25  ;;  %611 = vrot.lane.b32.xlu0 %v2934_v1, %s2589_s25  ;;  %v285_v0 = vrot.slane %v207_v59, 7  ;;  %v208_v1 = vld [vmem:[%s2677_s29 + $0xe0] sm:$0xff]  ;;  %4658 = vst [vmem:[#allocation38_spill] sm:$0xff] %v2976_v20  ;;  %v466_v59 = vrot.slane %v2958_v26, 1 }
  0x49   : > { %v287_v53 = vrot.slane %v208_v1, 7 }
  0x4a   : > { %v2982_v55 = vsel %vm244_vm0, %v284_v58, %v285_v0  ;;  %v2997_v11 = vsel %vm403_vm1, %v466_v59, %v467_v54 }
  0x4b   : > { %4659 = vst [vmem:[#allocation39_spill] sm:$0xff] %v2982_v55  ;;  %v472_v12 = vrot.slane %v2982_v55, 1  ;;  %4661 = vst [vmem:[#allocation41_spill] sm:$0xff] %v2997_v11  ;;  %v3004_v1 = vsel %vm244_vm0, %v287_v53, %v288_v13  ;;  %v3007_v43 = vsel %vm244_vm0, 0.0, %v287_v53 }
  0x4c   : > { %613 = vrot.lane.b32.xlu1 %v2949_v62, %s2589_s25  ;;  %615 = vrot.lane.b32.xlu0 %v2955_v18, %s2589_s25  ;;  %v2985_v62 = vsel %vm244_vm0, 0.0, %v284_v58  ;;  %v2988_v18 = vsel %vm244_vm0, %v285_v0, 0.0  ;;  %v3000_v58 = vsel %vm403_vm1, %v467_v54, %v469_v39  ;;  %4663 = vst [vmem:[#allocation43_spill] sm:$0xff] %v3004_v1  ;;  %4664 = vst [vmem:[#allocation44_spill] sm:$0xff] %v3007_v43  ;;  %v476_v39 = vrot.slane %v3007_v43, 1 }
  0x4d   : > { %4660 = vst [vmem:[#allocation40_spill] sm:$0xff] %v2985_v62  ;;  %v471_v3 = vrot.slane %v2985_v62, 1  ;;  %4662 = vst [vmem:[#allocation42_spill] sm:$0xff] %v3000_v58  ;;  %v474_v0 = vrot.slane %v2988_v18, 1  ;;  %v477_v53 = vrot.slane %v3004_v1, 1 }
  0x4f   : > { %v3017_v59 = vsel %vm403_vm1, %v471_v3, %v472_v12  ;;  %v3020_v54 = vsel %vm403_vm1, %v472_v12, %v474_v0  ;;  %v484_v12 = vrot.slane %v2692_v16, 2  ;;  %v485_v0 = vrot.slane %v2686_v14, 2 }
  0x50   : > { %617 = vrot.lane.b32.xlu1 %v2973_v23, %s2589_s25  ;;  %619 = vrot.lane.b32.xlu0 %v2976_v20, %s2589_s25  ;;  %v3010_v20 = vsel %vm244_vm0, %v288_v13, 0.0  ;;  %4665 = vst [vmem:[#allocation45_spill] sm:$0xff] %v3017_v59  ;;  %4666 = vst [vmem:[#allocation46_spill] sm:$0xff] %v3020_v54  ;;  %v3030_v13 = vsel %vm403_vm1, %v476_v39, %v477_v53  ;;  %v487_v39 = vrot.slane %v2689_v15, 2  ;;  %v492_v15 = vrot.slane %v2706_v24, 2 }
  0x51   : > { %v479_v23 = vrot.slane %v3010_v20, 1  ;;  %4667 = vst [vmem:[#allocation47_spill] sm:$0xff] %v3030_v13  ;;  %v499_v24 = vrot.slane %v2749_v47, 2 }
  0x53   : > { %v3033_v3 = vsel %vm403_vm1, %v477_v53, %v479_v23  ;;  %v489_v23 = vrot.slane %v2695_v17, 2  ;;  %v490_v53 = vrot.slane %v2701_v21, 2 }
  0x54   : > { %621 = vrot.lane.b32.xlu1 %v2997_v11, %s2589_s25  ;;  %623 = vrot.lane.b32.xlu0 %v3000_v58, %s2589_s25  ;;  %4668 = vst [vmem:[#allocation48_spill] sm:$0xff] %v3033_v3 }
  0x58   : > { %625 = vrot.lane.b32.xlu1 %v3017_v59, %s2589_s25  ;;  %627 = vrot.lane.b32.xlu0 %v3020_v54, %s2589_s25  ;;  %v4669_v59 = vmov 0.0   ;;  %v3046_v54 = vsel %vm481_vm2, %v484_v12, %v485_v0  ;;  %v494_v12 = vrot.slane %v2721_v31, 2 }
  0x59   : > { %v3042_v58 = vrot.slane %v4669_v59, 2  ;;  %v3058_v59 = vsel %vm481_vm2, %v489_v23, %v490_v53  ;;  %v500_v23 = vrot.slane %v2746_v46, 2 }
  0x5b   : > { %4670 = vst [vmem:[#allocation49_spill] sm:$0xff] %v3042_v58 }
  0x5c   : > { %629 = vrot.lane.b32.xlu1 %v3030_v13, %s2589_s25  ;;  %631 = vrot.lane.b32.xlu0 %v3033_v3, %s2589_s25  ;;  %v3055_v3 = vsel %vm481_vm2, %v485_v0, %v487_v39  ;;  %v495_v13 = vrot.slane %v2709_v25, 2  ;;  %v3069_v0 = vsel %vm481_vm2, %v490_v53, %v492_v15  ;;  %v502_v53 = vrot.slane %v2752_v48, 2 }
  0x5d   : > { %v504_v15 = vrot.slane %v2769_v56, 2  ;;  %v509_v48 = vrot.slane %v2791_v6, 2 }
  0x5e   : > { %v3072_v39 = vsel %vm481_vm2, %v494_v12, %v495_v13  ;;  %v505_v12 = vrot.slane %v2764_v52, 2 }
  0x5f   : > { %4671 = vst [vmem:[#allocation50_spill] sm:$0xff] %v3072_v39 }
  0x60   : > { %664 = vrot.lane.b32.xlu1 %v3042_v58, %s2590_s30  ;;  %666 = vrot.lane.b32.xlu0 %v3046_v54, %s2590_s30  ;;  %v497_v58 = vrot.slane %v2735_v37, 2  ;;  %v3084_v37 = vsel %vm481_vm2, %v499_v24, %v500_v23  ;;  %v510_v24 = vrot.slane %v2795_v9, 2 }
  0x61   : > { %4672 = vst [vmem:[#allocation51_spill] sm:$0xff] %v3084_v37 }
  0x62   : > { %v3081_v11 = vsel %vm481_vm2, %v495_v13, %v497_v58  ;;  %v3095_v58 = vsel %vm481_vm2, %v500_v23, %v502_v53  ;;  %v3098_v13 = vsel %vm481_vm2, %v504_v15, %v505_v12  ;;  %v3111_v23 = vsel %vm481_vm2, %v509_v48, %v510_v24 }
  0x63   : > { %4673 = vst [vmem:[#allocation52_spill] sm:$0xff] %v3098_v13  ;;  %4674 = vst [vmem:[#allocation53_spill] sm:$0xff] %v3111_v23  ;;  %v514_v53 = vrot.slane %v2812_v19, 2  ;;  %v515_v15 = vrot.slane %v2818_v27, 2  ;;  %v520_v48 = vrot.slane %v2835_v41, 2 }
  0x64   : > { %668 = vrot.lane.b32.xlu1 %v3055_v3, %s2590_s30  ;;  %670 = vrot.lane.b32.xlu0 %v3058_v59, %s2590_s30 }
  0x68   : > { %672 = vrot.lane.b32.xlu1 %v3069_v0, %s2590_s30  ;;  %674 = vrot.lane.b32.xlu0 %v3072_v39, %s2590_s30  ;;  %v507_v39 = vrot.slane %v2772_v57, 2 }
  0x6a   : > { %v3108_v57 = vsel %vm481_vm2, %v505_v12, %v507_v39  ;;  %v3124_v39 = vsel %vm481_vm2, %v514_v53, %v515_v15  ;;  %v519_v12 = vrot.slane %v2826_v35, 2  ;;  %v525_v53 = vrot.slane %v2861_v60, 2 }
  0x6b   : > { %4675 = vst [vmem:[#allocation54_spill] sm:$0xff] %v3124_v39 }
  0x6c   : > { %676 = vrot.lane.b32.xlu1 %v3081_v11, %s2590_s30  ;;  %678 = vrot.lane.b32.xlu0 %v3084_v37, %s2590_s30  ;;  %v512_v37 = vrot.slane %v2798_v10, 2 }
  0x6e   : > { %v3121_v10 = vsel %vm481_vm2, %v510_v24, %v512_v37  ;;  %v3137_v37 = vsel %vm481_vm2, %v519_v12, %v520_v48  ;;  %v524_v24 = vrot.slane %v2864_v61, 2  ;;  %v530_v12 = vrot.slane %v2887_v33, 2 }
  0x6f   : > { %4677 = vst [vmem:[#allocation56_spill] sm:$0xff] %v3137_v37 }
  0x70   : > { %680 = vrot.lane.b32.xlu1 %v3095_v58, %s2590_s30  ;;  %682 = vrot.lane.b32.xlu0 %v3098_v13, %s2590_s30  ;;  %v517_v13 = vrot.slane %v2821_v30, 2 }
  0x72   : > { %v3134_v30 = vsel %vm481_vm2, %v515_v15, %v517_v13  ;;  %v527_v13 = vrot.slane %v2868_v63, 2  ;;  %v529_v15 = vrot.slane %v2890_v36, 2  ;;  %v534_v63 = vrot.slane %v2909_v2, 2 }
  0x73   : > { %4676 = vst [vmem:[#allocation55_spill] sm:$0xff] %v3134_v30 }
  0x74   : > { %684 = vrot.lane.b32.xlu1 %v3108_v57, %s2590_s30  ;;  %686 = vrot.lane.b32.xlu0 %v3111_v23, %s2590_s30  ;;  %v522_v23 = vrot.slane %v2844_v49, 2  ;;  %v3149_v49 = vsel %vm481_vm2, %v524_v24, %v525_v53  ;;  %v535_v24 = vrot.slane %v2913_v7, 2 }
  0x78   : > { %688 = vrot.lane.b32.xlu1 %v3121_v10, %s2590_s30  ;;  %690 = vrot.lane.b32.xlu0 %v3124_v39, %s2590_s30  ;;  %v3146_v39 = vsel %vm481_vm2, %v520_v48, %v522_v23  ;;  %v3160_v23 = vsel %vm481_vm2, %v525_v53, %v527_v13  ;;  %v3163_v48 = vsel %vm481_vm2, %v529_v15, %v530_v12  ;;  %v539_v13 = vrot.slane %v2931_v42, 2 }
  0x79   : > { %4678 = vst [vmem:[#allocation57_spill] sm:$0xff] %v3146_v39  ;;  %v3176_v53 = vsel %vm481_vm2, %v534_v63, %v535_v24  ;;  %v540_v15 = vrot.slane %v2937_v32, 2  ;;  %v545_v63 = vrot.slane %v2961_v44, 2 }
  0x7a   : > { %4679 = vst [vmem:[#allocation58_spill] sm:$0xff] %v3176_v53 }
  0x7c   : > { %692 = vrot.lane.b32.xlu1 %v3134_v30, %s2590_s30  ;;  %694 = vrot.lane.b32.xlu0 %v3137_v37, %s2590_s30  ;;  %v532_v37 = vrot.slane %v2893_v40, 2  ;;  %v542_v30 = vrot.slane %v2940_v51, 2 }
  0x7e   : > { %v3173_v40 = vsel %vm481_vm2, %v530_v12, %v532_v37  ;;  %v3189_v37 = vsel %vm481_vm2, %v539_v13, %v540_v15  ;;  %v544_v12 = vrot.slane %v2958_v26, 2  ;;  %v550_v13 = vrot.slane %v2982_v55, 2 }
  0x7f   : > { %4681 = vst [vmem:[#allocation60_spill] sm:$0xff] %v3189_v37 }
  0x80   : > { %696 = vrot.lane.b32.xlu1 %v3146_v39, %s2590_s30  ;;  %698 = vrot.lane.b32.xlu0 %v3149_v49, %s2590_s30  ;;  %v537_v39 = vrot.slane %v2916_v8, 2  ;;  %v3201_v51 = vsel %vm481_vm2, %v544_v12, %v545_v63 }
  0x81   : > { %4683 = vst [vmem:[#allocation62_spill] sm:$0xff] %v3201_v51 }
  0x82   : > { %v3186_v8 = vsel %vm481_vm2, %v535_v24, %v537_v39  ;;  %v547_v39 = vrot.slane %v2964_v22, 2  ;;  %v549_v24 = vrot.slane %v2985_v62, 2  ;;  %v554_v22 = vrot.slane %v3007_v43, 2 }
  0x83   : > { %4680 = vst [vmem:[#allocation59_spill] sm:$0xff] %v3186_v8 }
  0x84   : > { %700 = vrot.lane.b32.xlu1 %v3160_v23, %s2590_s30  ;;  %702 = vrot.lane.b32.xlu0 %v3163_v48, %s2590_s30  ;;  %v3217_v12 = vsel %vm481_vm2, %v549_v24, %v550_v13 }
  0x85   : > { %4685 = vst [vmem:[#allocation64_spill] sm:$0xff] %v3217_v12 }
  0x88   : > { %704 = vrot.lane.b32.xlu1 %v3173_v40, %s2590_s30  ;;  %706 = vrot.lane.b32.xlu0 %v3176_v53, %s2590_s30  ;;  %v3198_v53 = vsel %vm481_vm2, %v540_v15, %v542_v30  ;;  %v552_v30 = vrot.slane %v2988_v18, 2  ;;  %v3214_v15 = vsel %vm481_vm2, %v545_v63, %v547_v39  ;;  %v557_v63 = vrot.slane %v3010_v20, 2 }
  0x89   : > { %4682 = vst [vmem:[#allocation61_spill] sm:$0xff] %v3198_v53  ;;  %4684 = vst [vmem:[#allocation63_spill] sm:$0xff] %v3214_v15 }
  0x8c   : > { %708 = vrot.lane.b32.xlu1 %v3186_v8, %s2590_s30  ;;  %710 = vrot.lane.b32.xlu0 %v3189_v37, %s2590_s30  ;;  %v3210_v8 = vpop.permute.xlu0 %571  ;;  %v555_v37 = vrot.slane %v3004_v1, 2 }
  0x8e   : > { %v3229_v18 = vsel %vm481_vm2, %v554_v22, %v555_v37 }
  0x8f   : > { %4687 = vst [vmem:[#allocation66_spill] sm:$0xff] %v3229_v18 }
  0x90   : > { %712 = vrot.lane.b32.xlu1 %v3198_v53, %s2590_s30  ;;  %714 = vrot.lane.b32.xlu0 %v3201_v51, %s2590_s30  ;;  %v3226_v51 = vsel %vm481_vm2, %v550_v13, %v552_v30 }
  0x91   : > { %4686 = vst [vmem:[#allocation65_spill] sm:$0xff] %v3226_v51 }
  0x94   : > { %716 = vrot.lane.b32.xlu1 %v3214_v15, %s2590_s30  ;;  %718 = vrot.lane.b32.xlu0 %v3217_v12, %s2590_s30  ;;  %v3241_v12 = vsel %vm481_vm2, %v555_v37, %v557_v63 }
  0x95   : > { %4688 = vst [vmem:[#allocation67_spill] sm:$0xff] %v3241_v12 }
  0x96   : > { %v3232_v39 = vpop.permute.xlu1 %575  ;;  %v3234_v24 = vpop.permute.xlu0 %573 }
  0x98   : > { %720 = vrot.lane.b32.xlu1 %v3226_v51, %s2590_s30  ;;  %722 = vrot.lane.b32.xlu0 %v3229_v18, %s2590_s30 }
  0x9a   : > { %v3243_v13 = vpop.permute.xlu1 %577  ;;  %v3245_v30 = vpop.permute.xlu0 %579 }
  0x9c   : > { %724 = vrot.lane.b32.xlu1 %v3241_v12, %s2590_s30  ;;  %757 = vrot.lane.b32.xlu0 %v2692_v16, %s2591_s4 }
  0x9e   : > { %v3251_v20 = vpop.permute.xlu1 %581  ;;  %v3253_v22 = vpop.permute.xlu0 %583 }
  0x9f   : > { %4689 = vst [vmem:[#allocation68_spill] sm:$0xff] %v3251_v20  ;;  %4690 = vst [vmem:[#allocation69_spill] sm:$0xff] %v3253_v22  ;;  %v1589_v20 = vld [vmem:[%s4507_s1 + $0x18] sm:$0xff] }
  0xa0   : > { %759 = vrot.lane.b32.xlu1 %v2686_v14, %s2591_s4  ;;  %761 = vrot.lane.b32.xlu0 %v2695_v17, %s2591_s4 }
  0xa2   : > { %v3259_v37 = vpop.permute.xlu1 %585  ;;  %v3261_v63 = vpop.permute.xlu0 %587 }
  0xa3   : > { %4691 = vst [vmem:[#allocation70_spill] sm:$0xff] %v3259_v37  ;;  %4692 = vst [vmem:[#allocation71_spill] sm:$0xff] %v3261_v63 }
  0xa4   : > { %763 = vrot.lane.b32.xlu1 %v2701_v21, %s2591_s4  ;;  %765 = vrot.lane.b32.xlu0 %v2721_v31, %s2591_s4 }
  0xa6   : > { %v3267_v12 = vpop.permute.xlu1 %589  ;;  %v3269_v18 = vpop.permute.xlu0 %591 }
  0xa7   : > { %4693 = vst [vmem:[#allocation72_spill] sm:$0xff] %v3267_v12  ;;  %4694 = vst [vmem:[#allocation73_spill] sm:$0xff] %v3269_v18 }
  0xa8   : > { %767 = vrot.lane.b32.xlu1 %v2709_v25, %s2591_s4  ;;  %769 = vrot.lane.b32.xlu0 %v2749_v47, %s2591_s4 }
  0xaa   : > { %v3275_v51 = vpop.permute.xlu1 %593  ;;  %v3277_v15 = vpop.permute.xlu0 %595 }
  0xab   : > { %4695 = vst [vmem:[#allocation74_spill] sm:$0xff] %v3275_v51  ;;  %4696 = vst [vmem:[#allocation75_spill] sm:$0xff] %v3277_v15 }
  0xac   : > { %771 = vrot.lane.b32.xlu1 %v2746_v46, %s2591_s4  ;;  %773 = vrot.lane.b32.xlu0 %v2769_v56, %s2591_s4 }
  0xae   : > { %v3283_v63 = vpop.permute.xlu1 %597  ;;  %v3285_v12 = vpop.permute.xlu0 %599 }
  0xaf   : > { %4697 = vst [vmem:[#allocation76_spill] sm:$0xff] %v3283_v63  ;;  %4698 = vst [vmem:[#allocation77_spill] sm:$0xff] %v3285_v12 }
  0xb0   : > { %775 = vrot.lane.b32.xlu1 %v2764_v52, %s2591_s4  ;;  %777 = vrot.lane.b32.xlu0 %v2791_v6, %s2591_s4 }
  0xb2   : > { %v3291_v18 = vpop.permute.xlu1 %601  ;;  %v3293_v51 = vpop.permute.xlu0 %603 }
  0xb3   : > { %4699 = vst [vmem:[#allocation78_spill] sm:$0xff] %v3291_v18  ;;  %4700 = vst [vmem:[#allocation79_spill] sm:$0xff] %v3293_v51 }
  0xb4   : > { %779 = vrot.lane.b32.xlu1 %v2795_v9, %s2591_s4  ;;  %781 = vrot.lane.b32.xlu0 %v2812_v19, %s2591_s4 }
  0xb6   : > { %v3299_v15 = vpop.permute.xlu1 %605  ;;  %v3301_v63 = vpop.permute.xlu0 %607 }
  0xb7   : > { %4701 = vst [vmem:[#allocation80_spill] sm:$0xff] %v3299_v15  ;;  %4702 = vst [vmem:[#allocation81_spill] sm:$0xff] %v3301_v63 }
  0xb8   : > { %783 = vrot.lane.b32.xlu1 %v2818_v27, %s2591_s4  ;;  %785 = vrot.lane.b32.xlu0 %v2826_v35, %s2591_s4 }
  0xba   : > { %v3307_v12 = vpop.permute.xlu1 %609  ;;  %v3309_v37 = vpop.permute.xlu0 %611 }
  0xbb   : > { %4703 = vst [vmem:[#allocation82_spill] sm:$0xff] %v3307_v12  ;;  %4704 = vst [vmem:[#allocation83_spill] sm:$0xff] %v3309_v37 }
  0xbc   : > { %787 = vrot.lane.b32.xlu1 %v2835_v41, %s2591_s4  ;;  %789 = vrot.lane.b32.xlu0 %v2864_v61, %s2591_s4 }
  0xbe   : > { %v3315_v51 = vpop.permute.xlu1 %613  ;;  %v3317_v15 = vpop.permute.xlu0 %615 }
  0xbf   : > { %4705 = vst [vmem:[#allocation84_spill] sm:$0xff] %v3315_v51  ;;  %4706 = vst [vmem:[#allocation85_spill] sm:$0xff] %v3317_v15 }
  0xc0   : > { %791 = vrot.lane.b32.xlu1 %v2861_v60, %s2591_s4  ;;  %793 = vrot.lane.b32.xlu0 %v2890_v36, %s2591_s4  ;;  %v3361_v60 = vld [vmem:[%s2677_s29 + $0xf8] sm:$0xff] }
  0xc1   : > { %4715 = vst [vmem:[#allocation94_spill] sm:$0xff] %v3361_v60 }
  0xc2   : > { %v3323_v12 = vpop.permute.xlu1 %617  ;;  %v3325_v37 = vpop.permute.xlu0 %619 }
  0xc3   : > { %4707 = vst [vmem:[#allocation86_spill] sm:$0xff] %v3323_v12  ;;  %4708 = vst [vmem:[#allocation87_spill] sm:$0xff] %v3325_v37 }
  0xc4   : > { %795 = vrot.lane.b32.xlu1 %v2887_v33, %s2591_s4  ;;  %797 = vrot.lane.b32.xlu0 %v2909_v2, %s2591_s4 }
  0xc6   : > { %v3331_v51 = vpop.permute.xlu1 %621  ;;  %v3333_v15 = vpop.permute.xlu0 %623 }
  0xc7   : > { %4709 = vst [vmem:[#allocation88_spill] sm:$0xff] %v3331_v51  ;;  %4710 = vst [vmem:[#allocation89_spill] sm:$0xff] %v3333_v15  ;;  %v210_v15 = vld [vmem:[%s2677_s29 + $0xf0] sm:$0xff]  ;;  %s4416_s29 = sand.u32 1, %s2578_s13  }
  0xc8   : > { %799 = vrot.lane.b32.xlu1 %v2913_v7, %s2591_s4  ;;  %801 = vrot.lane.b32.xlu0 %v2931_v42, %s2591_s4  ;;  %s2284_s30 = sshll.u32 %s4416_s29, 4  ;;  %s2162_s17 = scalar_lea.sflag [#allocation5], %s4416_s29 }
  0xca   : > { %v3339_v12 = vpop.permute.xlu1 %625  ;;  %v3341_v37 = vpop.permute.xlu0 %627 }
  0xcb   : > { %4711 = vst [vmem:[#allocation90_spill] sm:$0xff] %v3339_v12  ;;  %4712 = vst [vmem:[#allocation91_spill] sm:$0xff] %v3341_v37  ;;  %v290_v12 = vrot.slane %v210_v15, 7 }
  0xcc   : > { %803 = vrot.lane.b32.xlu1 %v2937_v32, %s2591_s4  ;;  %805 = vrot.lane.b32.xlu0 %v2958_v26, %s2591_s4  ;;  %v4740_v26 = vld [vmem:[#allocation23_spill] sm:$0xff] }
  0xce   : > { %v3347_v51 = vpop.permute.xlu1 %629  ;;  %v3349_v63 = vpop.permute.xlu0 %631 }
  0xcf   : > { %4713 = vst [vmem:[#allocation92_spill] sm:$0xff] %v3347_v51  ;;  %4714 = vst [vmem:[#allocation93_spill] sm:$0xff] %v3349_v63  ;;  %v3368_v51 = vsel %vm244_vm0, 0.0, %v290_v12  ;;  %v4606_v63 = vrot.slane %v3361_v60, 7 }
  0xd0   : > { %807 = vrot.lane.b32.xlu1 %v2961_v44, %s2591_s4  ;;  %809 = vrot.lane.b32.xlu0 %v2985_v62, %s2591_s4  ;;  %4716 = vst [vmem:[#allocation95_spill] sm:$0xff] %v3368_v51 }
  0xd2   : > { %v3356_v18 = vpop.permute.xlu1 %664  ;;  %v3358_v37 = vpop.permute.xlu0 %666 }
  0xd4   : > { %811 = vrot.lane.b32.xlu1 %v2982_v55, %s2591_s4  ;;  %813 = vrot.lane.b32.xlu0 %v3007_v43, %s2591_s4  ;;  %v3382_v55 = vsel %vm244_vm0, %v290_v12, %v4606_v63 }
  0xd5   : > { %4717 = vst [vmem:[#allocation96_spill] sm:$0xff] %v3382_v55 }
  0xd6   : > { %v3371_v44 = vpop.permute.xlu1 %668  ;;  %v3373_v15 = vpop.permute.xlu0 %670 }
  0xd8   : > { %815 = vrot.lane.b32.xlu1 %v3004_v1, %s2591_s4  ;;  %817 = vrot.lane.b32.xlu0 %v3368_v51, %s2591_s4  ;;  %v4728_v51 = vld [vmem:[#allocation13_spill] sm:$0xff] }
  0xda   : > { %v3384_v43 = vpop.permute.xlu1 %672  ;;  %v3386_v62 = vpop.permute.xlu0 %674 }
  0xdb   : > { %4718 = vst [vmem:[#allocation97_spill] sm:$0xff] %v3384_v43  ;;  %4719 = vst [vmem:[#allocation98_spill] sm:$0xff] %v3386_v62  ;;  %v4743_v43 = vld [vmem:[#allocation24_spill] sm:$0xff] }
  0xdc   : > { %819 = vrot.lane.b32.xlu1 %v3382_v55, %s2591_s4  ;;  %853 = vrot.lane.b32.xlu0 %v2717_v29, %s2592_s5  ;;  %s4422_s4 = scalar_lea.vmem [#allocation2], %s2284_s30 }
  0xde   : > { %v3392_v1 = vpop.permute.xlu1 %676  ;;  %v3394_v61 = vpop.permute.xlu0 %678 }
  0xdf   : > { %4720 = vst [vmem:[#allocation99_spill] sm:$0xff] %v3392_v1  ;;  %4721 = vst [vmem:[#allocation100_spill] sm:$0xff] %v3394_v61  ;;  %v4736_v1 = vld [vmem:[#allocation19_spill] sm:$0xff] }
  0xe0   : > { %855 = vrot.lane.b32.xlu1 %v2714_v28, %s2592_s5  ;;  %857 = vrot.lane.b32.xlu0 %v2730_v34, %s2592_s5 }
  0xe2   : > { %v3400_v12 = vpop.permute.xlu1 %680  ;;  %v3402_v63 = vpop.permute.xlu0 %682 }
  0xe3   : > { %4722 = vst [vmem:[#allocation101_spill] sm:$0xff] %v3400_v12  ;;  %4723 = vst [vmem:[#allocation102_spill] sm:$0xff] %v3402_v63  ;;  %v4732_v12 = vld [vmem:[#allocation17_spill] sm:$0xff] }
  0xe4   : > { %859 = vrot.lane.b32.xlu1 %v2738_v38, %s2592_s5  ;;  %861 = vrot.lane.b32.xlu0 %v2743_v45, %s2592_s5 }
  0xe6   : > { %v3408_v29 = vpop.permute.xlu1 %684  ;;  %v3410_v60 = vpop.permute.xlu0 %686 }
  0xe7   : > { %4724 = vst [vmem:[#allocation103_spill] sm:$0xff] %v3408_v29  ;;  %4725 = vst [vmem:[#allocation104_spill] sm:$0xff] %v3410_v60  ;;  %v4731_v60 = vld [vmem:[#allocation14_spill] sm:$0xff] }
  0xe8   : > { %863 = vrot.lane.b32.xlu1 %v2760_v50, %s2592_s5  ;;  %865 = vrot.lane.b32.xlu0 %v2785_v4, %s2592_s5 }
  0xea   : > { %v3416_v28 = vpop.permute.xlu1 %688  ;;  %v3418_v55 = vpop.permute.xlu0 %690 }
  0xeb   : > { %4726 = vst [vmem:[#allocation105_spill] sm:$0xff] %v3416_v28  ;;  %4727 = vst [vmem:[#allocation106_spill] sm:$0xff] %v3418_v55  ;;  %v4735_v55 = vld [vmem:[#allocation18_spill] sm:$0xff] }
  0xec   : > { %867 = vrot.lane.b32.xlu1 %v2788_v5, %s2592_s5  ;;  %869 = vrot.lane.b32.xlu0 %v4728_v51, %s2592_s5 }
  0xee   : > { %v3424_v63 = vpop.permute.xlu1 %692  ;;  %v3426_v29 = vpop.permute.xlu0 %694 }
  0xef   : > { %4729 = vst [vmem:[#allocation13_spill] sm:$0xff] %v3424_v63  ;;  %4730 = vst [vmem:[#allocation107_spill] sm:$0xff] %v3426_v29  ;;  %v1586_v29 = vld [vmem:[%s4507_s1] sm:$0xff] }
  0xf0   : > { %871 = vrot.lane.b32.xlu1 %v4731_v60, %s2592_s5  ;;  %873 = vrot.lane.b32.xlu0 %v4732_v12, %s2592_s5 }
  0xf2   : > { %v3432_v61 = vpop.permute.xlu1 %696  ;;  %v3434_v28 = vpop.permute.xlu0 %698 }
  0xf3   : > { %4733 = vst [vmem:[#allocation14_spill] sm:$0xff] %v3432_v61  ;;  %4734 = vst [vmem:[#allocation17_spill] sm:$0xff] %v3434_v28  ;;  %v1587_v61 = vld [vmem:[%s4507_s1 + $0x8] sm:$0xff] }
  0xf4   : > { %875 = vrot.lane.b32.xlu1 %v4735_v55, %s2592_s5  ;;  %877 = vrot.lane.b32.xlu0 %v4736_v1, %s2592_s5  ;;  %v4739_v28 = vld [vmem:[#allocation20_spill] sm:$0xff]  ;;  %v2425_v62 = vpack.c.bf16 %v1587_v61, %v1586_v29  ;;  %v4744_v61 = vld [vmem:[#allocation27_spill] sm:$0xff] }
  0xf6   : > { %v3440_v22 = vpop.permute.xlu1 %700  ;;  %v3442_v63 = vpop.permute.xlu0 %702  ;;  %2426 = vmatprep.subr.bf16.mxu0 %v2425_v62  ;;  %2433 = vmatprep.subr.bf16.mxu1 %v2425_v62 }
  0xf7   : > { %4737 = vst [vmem:[#allocation18_spill] sm:$0xff] %v3440_v22  ;;  %4738 = vst [vmem:[#allocation19_spill] sm:$0xff] %v3442_v63  ;;  %2428 = vmatpush3.bf16.msra.mxu0 %v2425_v62  ;;  %v1588_v63 = vld [vmem:[%s4507_s1 + $0x10] sm:$0xff]  ;;  %2436 = vmatpush3.bf16.msra.mxu1 %v2425_v62  ;;  %v1590_v62 = vld [vmem:[%s4507_s1 + $0x20] sm:$0xf] }
  0xf8   : > { %879 = vrot.lane.b32.xlu1 %v4739_v28, %s2592_s5  ;;  %881 = vrot.lane.b32.xlu0 %v4740_v26, %s2592_s5  ;;  %v2429_v29 = vpack.c.bf16 %v1589_v20, %v1588_v63 }
  0xfa   : > { %v3454_v53 = vpop.permute.xlu1 %704  ;;  %v3456_v22 = vpop.permute.xlu0 %706  ;;  %2430 = vmatprep.subr.bf16.mxu0 %v2429_v29  ;;  %2434 = vmatprep.subr.bf16.mxu1 %v2429_v29 }
  0xfb   : > { %4741 = vst [vmem:[#allocation20_spill] sm:$0xff] %v3454_v53  ;;  %4742 = vst [vmem:[#allocation23_spill] sm:$0xff] %v3456_v22  ;;  %2432 = vmatpush3.bf16.msra.mxu0 %v2429_v29  ;;  %2437 = vmatpush3.bf16.msra.mxu1 %v2429_v29 }
  0xfc   : > { %883 = vrot.lane.b32.xlu1 %v4743_v43, %s2592_s5  ;;  %885 = vrot.lane.b32.xlu0 %v4744_v61, %s2592_s5 }
  0xfd   : > { %2375 = vmatprep.subr.msk.mxu0 %vm1688_vm3, %v1590_v62  ;;  %2435 = vmatprep.subr.msk.mxu1 %vm1688_vm3, %v1590_v62 }
  0xfe   : > { %v3468_v22 = vpop.permute.xlu1 %708  ;;  %v3470_v53 = vpop.permute.xlu0 %710 }
  0xff   : > { %4745 = vst [vmem:[#allocation24_spill] sm:$0xff] %v3468_v22  ;;  %4746 = vst [vmem:[#allocation27_spill] sm:$0xff] %v3470_v53  ;;  %2376 = vmatpush3.msk.msra.mxu0 %vm1688_vm3, %v1590_v62  ;;  %2438 = vmatpush3.msk.msra.mxu1 %vm1688_vm3, %v1590_v62 }
 0x100   : > { %949 = vrot.lane.b32.xlu1 %v3046_v54, %s2593_s20  ;;  %951 = vrot.lane.b32.xlu0 %v3055_v3, %s2593_s20 }
 0x102   : > { %v3479_v20 = vpop.permute.xlu1 %712  ;;  %v3481_v63 = vpop.permute.xlu0 %714 }
 0x103   : > { %4747 = vst [vmem:[#allocation108_spill] sm:$0xff] %v3479_v20  ;;  %4748 = vst [vmem:[#allocation109_spill] sm:$0xff] %v3481_v63 }
 0x104   : > { %1045 = vrot.lane.b32.xlu1 %v2695_v17, %s2594_s26  ;;  %1047 = vrot.lane.b32.xlu0 %v2701_v21, %s2594_s26 }
 0x106   : > { %v3487_v54 = vpop.permute.xlu1 %716  ;;  %v3489_v3 = vpop.permute.xlu0 %718 }
 0x107   : > { %4749 = vst [vmem:[#allocation110_spill] sm:$0xff] %v3487_v54  ;;  %4750 = vst [vmem:[#allocation111_spill] sm:$0xff] %v3489_v3 }
 0x108   : > { %1138 = vrot.lane.b32.xlu1 %v2730_v34, %s2595_s27  ;;  %1140 = vrot.lane.b32.xlu0 %v2738_v38, %s2595_s27 }
 0x10a   : > { %v3495_v29 = vpop.permute.xlu1 %720  ;;  %v3497_v62 = vpop.permute.xlu0 %722 }
 0x10b   : > { %4751 = vst [vmem:[#allocation112_spill] sm:$0xff] %v3495_v29  ;;  %4752 = vst [vmem:[#allocation113_spill] sm:$0xff] %v3497_v62  ;;  %v4754_v29 = vld [vmem:[#allocation50_spill] sm:$0xff] }
 0x10c   : > { %1231 = vrot.lane.b32.xlu1 %v3058_v59, %s2596_s28  ;;  %953 = vrot.lane.b32.xlu0 %v3058_v59, %s2593_s20 }
 0x10e   : > { %v3503_v54 = vpop.permute.xlu1 %724  ;;  %v3505_v3 = vpop.permute.xlu0 %757 }
 0x10f   : > { %4753 = vst [vmem:[#allocation114_spill] sm:$0xff] %v3503_v54 }
 0x110   : > { %1233 = vrot.lane.b32.xlu1 %v3069_v0, %s2596_s28  ;;  %955 = vrot.lane.b32.xlu0 %v3069_v0, %s2593_s20 }
 0x112   : > { %v3511_v34 = vpop.permute.xlu1 %759  ;;  %v3513_v38 = vpop.permute.xlu0 %761 }
 0x114   : > { %1049 = vrot.lane.b32.xlu1 %v2721_v31, %s2594_s26  ;;  %1051 = vrot.lane.b32.xlu0 %v2709_v25, %s2594_s26 }
 0x116   : > { %v3519_v59 = vpop.permute.xlu1 %763  ;;  %v3521_v62 = vpop.permute.xlu0 %765 }
 0x118   : > { %1142 = vrot.lane.b32.xlu1 %v2743_v45, %s2595_s27  ;;  %1144 = vrot.lane.b32.xlu0 %v2760_v50, %s2595_s27 }
 0x11a   : > { %v3527_v0 = vpop.permute.xlu1 %767  ;;  %v3529_v54 = vpop.permute.xlu0 %769 }
 0x11c   : > { %1235 = vrot.lane.b32.xlu1 %v4754_v29, %s2596_s28  ;;  %957 = vrot.lane.b32.xlu0 %v4754_v29, %s2593_s20 }
 0x11e   : > { %v3535_v63 = vpop.permute.xlu1 %771  ;;  %v3537_v20 = vpop.permute.xlu0 %773 }
 0x120   : > { %1237 = vrot.lane.b32.xlu1 %v3081_v11, %s2596_s28  ;;  %959 = vrot.lane.b32.xlu0 %v3081_v11, %s2593_s20 }
 0x122   : > { %v3543_v45 = vpop.permute.xlu1 %775  ;;  %v3545_v50 = vpop.permute.xlu0 %777 }
 0x123   : > { %4755 = vst [vmem:[#allocation50_spill] sm:$0xff] %v3543_v45  ;;  %4756 = vst [vmem:[#allocation115_spill] sm:$0xff] %v3545_v50  ;;  %v4761_v50 = vld [vmem:[#allocation51_spill] sm:$0xff] }
 0x124   : > { %1053 = vrot.lane.b32.xlu1 %v2749_v47, %s2594_s26  ;;  %1055 = vrot.lane.b32.xlu0 %v2746_v46, %s2594_s26 }
 0x126   : > { %v3551_v29 = vpop.permute.xlu1 %779  ;;  %v3553_v53 = vpop.permute.xlu0 %781 }
 0x127   : > { %4757 = vst [vmem:[#allocation116_spill] sm:$0xff] %v3551_v29  ;;  %4758 = vst [vmem:[#allocation117_spill] sm:$0xff] %v3553_v53 }
 0x128   : > { %1146 = vrot.lane.b32.xlu1 %v2785_v4, %s2595_s27  ;;  %1148 = vrot.lane.b32.xlu0 %v2788_v5, %s2595_s27 }
 0x12a   : > { %v3559_v11 = vpop.permute.xlu1 %783  ;;  %v3561_v22 = vpop.permute.xlu0 %785 }
 0x12b   : > { %4759 = vst [vmem:[#allocation118_spill] sm:$0xff] %v3559_v11  ;;  %4760 = vst [vmem:[#allocation119_spill] sm:$0xff] %v3561_v22  ;;  %v4766_v22 = vld [vmem:[#allocation28_spill] sm:$0xff] }
 0x12c   : > { %1239 = vrot.lane.b32.xlu1 %v4761_v50, %s2596_s28  ;;  %961 = vrot.lane.b32.xlu0 %v4761_v50, %s2593_s20 }
 0x12e   : > { %v3567_v45 = vpop.permute.xlu1 %787  ;;  %v3569_v29 = vpop.permute.xlu0 %789 }
 0x12f   : > { %4762 = vst [vmem:[#allocation51_spill] sm:$0xff] %v3567_v45 }
 0x130   : > { %1241 = vrot.lane.b32.xlu1 %v3095_v58, %s2596_s28  ;;  %963 = vrot.lane.b32.xlu0 %v3095_v58, %s2593_s20 }
 0x132   : > { %v3575_v4 = vpop.permute.xlu1 %791  ;;  %v3577_v5 = vpop.permute.xlu0 %793 }
 0x133   : > { %4763 = vst [vmem:[#allocation120_spill] sm:$0xff] %v3577_v5 }
 0x134   : > { %1057 = vrot.lane.b32.xlu1 %v2769_v56, %s2594_s26  ;;  %1059 = vrot.lane.b32.xlu0 %v2764_v52, %s2594_s26 }
 0x136   : > { %v3583_v50 = vpop.permute.xlu1 %795  ;;  %v3585_v45 = vpop.permute.xlu0 %797 }
 0x137   : > { %4764 = vst [vmem:[#allocation121_spill] sm:$0xff] %v3583_v50  ;;  %4765 = vst [vmem:[#allocation122_spill] sm:$0xff] %v3585_v45  ;;  %v4771_v45 = vld [vmem:[#allocation52_spill] sm:$0xff] }
 0x138   : > { %1150 = vrot.lane.b32.xlu1 %v4728_v51, %s2595_s27  ;;  %887 = vrot.lane.b32.xlu0 %v4766_v22, %s2592_s5 }
 0x13a   : > { %v3591_v58 = vpop.permute.xlu1 %799  ;;  %v3593_v11 = vpop.permute.xlu0 %801 }
 0x13b   : > { %4767 = vst [vmem:[#allocation28_spill] sm:$0xff] %v3591_v58  ;;  %4768 = vst [vmem:[#allocation123_spill] sm:$0xff] %v3593_v11 }
 0x13c   : > { %981 = vrot.lane.b32.xlu1 %v3149_v49, %s2593_s20  ;;  %1152 = vrot.lane.b32.xlu0 %v4731_v60, %s2595_s27 }
 0x13e   : > { %v3599_v53 = vpop.permute.xlu1 %803  ;;  %v3601_v52 = vpop.permute.xlu0 %805 }
 0x13f   : > { %4769 = vst [vmem:[#allocation124_spill] sm:$0xff] %v3599_v53  ;;  %4770 = vst [vmem:[#allocation125_spill] sm:$0xff] %v3601_v52  ;;  %v4780_v52 = vld [vmem:[#allocation32_spill] sm:$0xff] }
 0x140   : > { %1243 = vrot.lane.b32.xlu1 %v4771_v45, %s2596_s28  ;;  %965 = vrot.lane.b32.xlu0 %v4771_v45, %s2593_s20 }
 0x142   : > { %v3607_v51 = vpop.permute.xlu1 %807  ;;  %v3609_v58 = vpop.permute.xlu0 %809 }
 0x143   : > { %4772 = vst [vmem:[#allocation52_spill] sm:$0xff] %v3607_v51  ;;  %4773 = vst [vmem:[#allocation126_spill] sm:$0xff] %v3609_v58 }
 0x144   : > { %983 = vrot.lane.b32.xlu1 %v3160_v23, %s2593_s20  ;;  %1077 = vrot.lane.b32.xlu0 %v2890_v36, %s2594_s26 }
 0x146   : > { %v3615_v60 = vpop.permute.xlu1 %811  ;;  %v3617_v53 = vpop.permute.xlu0 %813 }
 0x147   : > { %4774 = vst [vmem:[#allocation127_spill] sm:$0xff] %v3615_v60  ;;  %4775 = vst [vmem:[#allocation128_spill] sm:$0xff] %v3617_v53  ;;  %v4779_v53 = vld [vmem:[#allocation31_spill] sm:$0xff] }
 0x148   : > { %1245 = vrot.lane.b32.xlu1 %v3108_v57, %s2596_s28  ;;  %967 = vrot.lane.b32.xlu0 %v3108_v57, %s2593_s20 }
 0x14a   : > { %v3623_v45 = vpop.permute.xlu1 %815  ;;  %v3625_v51 = vpop.permute.xlu0 %817 }
 0x14b   : > { %4776 = vst [vmem:[#allocation129_spill] sm:$0xff] %v3623_v45  ;;  %4777 = vst [vmem:[#allocation130_spill] sm:$0xff] %v3625_v51 }
 0x14c   : > { %1061 = vrot.lane.b32.xlu1 %v2791_v6, %s2594_s26  ;;  %1079 = vrot.lane.b32.xlu0 %v2887_v33, %s2594_s26  ;;  %v4781_v33 = vld [vmem:[#allocation53_spill] sm:$0xff] }
 0x14e   : > { %v3631_v58 = vpop.permute.xlu1 %819  ;;  %v854_v60 = vpop.permute.xlu0 %853 }
 0x14f   : > { %4778 = vst [vmem:[#allocation131_spill] sm:$0xff] %v3631_v58 }
 0x150   : > { %1170 = vrot.lane.b32.xlu1 %v4779_v53, %s2595_s27  ;;  %889 = vrot.lane.b32.xlu0 %v4779_v53, %s2592_s5 }
 0x152   : > { %v3637_v57 = vpop.permute.xlu1 %855  ;;  %v3639_v45 = vpop.permute.xlu0 %857 }
 0x154   : > { %1063 = vrot.lane.b32.xlu1 %v2795_v9, %s2594_s26  ;;  %1154 = vrot.lane.b32.xlu0 %v4732_v12, %s2595_s27 }
 0x156   : > { %v3645_v51 = vpop.permute.xlu1 %859  ;;  %v3647_v58 = vpop.permute.xlu0 %861 }
 0x158   : > { %1172 = vrot.lane.b32.xlu1 %v4780_v52, %s2595_s27  ;;  %1263 = vrot.lane.b32.xlu0 %v3163_v48, %s2596_s28 }
 0x15a   : > { %v3653_v53 = vpop.permute.xlu1 %863  ;;  %v3655_v11 = vpop.permute.xlu0 %865 }
 0x15c   : > { %891 = vrot.lane.b32.xlu1 %v4780_v52, %s2592_s5  ;;  %985 = vrot.lane.b32.xlu0 %v3163_v48, %s2593_s20 }
 0x15e   : > { %v3661_v12 = vpop.permute.xlu1 %867  ;;  %v3663_v9 = vpop.permute.xlu0 %869 }
 0x160   : > { %1156 = vrot.lane.b32.xlu1 %v4735_v55, %s2595_s27  ;;  %1247 = vrot.lane.b32.xlu0 %v4781_v33, %s2596_s28 }
 0x162   : > { %v3669_v6 = vpop.permute.xlu1 %871  ;;  %v3671_v36 = vpop.permute.xlu0 %873 }
 0x163   : > { %4782 = vst [vmem:[#allocation31_spill] sm:$0xff] %v3671_v36 }
 0x164   : > { %1265 = vrot.lane.b32.xlu1 %v3173_v40, %s2596_s28  ;;  %969 = vrot.lane.b32.xlu0 %v4781_v33, %s2593_s20 }
 0x166   : > { %v3677_v52 = vpop.permute.xlu1 %875  ;;  %v3679_v48 = vpop.permute.xlu0 %877 }
 0x167   : > { %4783 = vst [vmem:[#allocation32_spill] sm:$0xff] %v3677_v52  ;;  %4784 = vst [vmem:[#allocation53_spill] sm:$0xff] %v3679_v48 }
 0x168   : > { %987 = vrot.lane.b32.xlu1 %v3173_v40, %s2593_s20  ;;  %1081 = vrot.lane.b32.xlu0 %v2909_v2, %s2594_s26 }
 0x16a   : > { %v3685_v55 = vpop.permute.xlu1 %879  ;;  %v3687_v50 = vpop.permute.xlu0 %881 }
 0x16b   : > { %4785 = vst [vmem:[#allocation132_spill] sm:$0xff] %v3685_v55  ;;  %4786 = vst [vmem:[#allocation133_spill] sm:$0xff] %v3687_v50  ;;  %v4788_v50 = vld [vmem:[#allocation33_spill] sm:$0xff]  ;;  %v1325_v55 = vsel %vm1324_vm4, 0.0, %v3210_v8 }
 0x16c   : > { %1249 = vrot.lane.b32.xlu1 %v3121_v10, %s2596_s28  ;;  %971 = vrot.lane.b32.xlu0 %v3121_v10, %s2593_s20 }
 0x16e   : > { %v3693_v33 = vpop.permute.xlu1 %883  ;;  %v3695_v52 = vpop.permute.xlu0 %885 }
 0x16f   : > { %4787 = vst [vmem:[#allocation134_spill] sm:$0xff] %v3693_v33 }
 0x170   : > { %1065 = vrot.lane.b32.xlu1 %v2812_v19, %s2594_s26  ;;  %1083 = vrot.lane.b32.xlu0 %v2913_v7, %s2594_s26  ;;  %v1357_v7 = vsel %vm1356_vm5, %v1325_v55, %v3356_v18 }
 0x172   : > { %v950_v40 = vpop.permute.xlu1 %949  ;;  %v952_v2 = vpop.permute.xlu0 %951 }
 0x174   : > { %1174 = vrot.lane.b32.xlu1 %v4788_v50, %s2595_s27  ;;  %893 = vrot.lane.b32.xlu0 %v4788_v50, %s2592_s5  ;;  %v1389_v50 = vsel %vm1388_vm6, %v1357_v7, %v3505_v3  ;;  %v1390_v3 = vsel %vm1388_vm6, %v1357_v7, %v3511_v34 }
 0x175   : > { %v1422_v36 = vsel %vm1421_vm7, %v1389_v50, %v854_v60 }
 0x176   : > { %v1046_v10 = vpop.permute.xlu1 %1045  ;;  %v1048_v33 = vpop.permute.xlu0 %1047  ;;  %v1455_v8 = vsel %vm1454_vm8, %v1422_v36, %v950_v40  ;;  %v1423_v36 = vsel %vm1421_vm7, %v1390_v3, %v3637_v57 }
 0x177   : > { %v1488_v18 = vsel %vm1487_vm9, %v1455_v8, %v1046_v10  ;;  %v1456_v40 = vsel %vm1454_vm8, %v1423_v36, %v952_v2 }
 0x178   : > { %1067 = vrot.lane.b32.xlu1 %v2818_v27, %s2594_s26  ;;  %1158 = vrot.lane.b32.xlu0 %v4736_v1, %s2595_s27  ;;  %v4789_v27 = vld [vmem:[#allocation34_spill] sm:$0xff]  ;;  %v1489_v7 = vsel %vm1487_vm9, %v1456_v40, %v1048_v33  ;;  %v1326_v33 = vsel %vm1324_vm4, %v2692_v16, %v3234_v24  ;;  %v1327_v16 = vsel %vm1324_vm4, %v2686_v14, %v3232_v39 }
 0x179   : > { %v4790_v1 = vld [vmem:[#allocation58_spill] sm:$0xff] }
 0x17a   : > { %v1139_v19 = vpop.permute.xlu1 %1138  ;;  %v1141_v48 = vpop.permute.xlu0 %1140 }
 0x17b   : > { %v1521_v55 = vsel %vm1520_vm10, %v1488_v18, %v1139_v19  ;;  %v1522_v19 = vsel %vm1520_vm10, %v1489_v7, %v1141_v48  ;;  %v4792_v48 = vld [vmem:[#allocation59_spill] sm:$0xff] }
 0x17c   : > { %1176 = vrot.lane.b32.xlu1 %v4789_v27, %s2595_s27  ;;  %1267 = vrot.lane.b32.xlu0 %v4790_v1, %s2596_s28 }
 0x17e   : > { %v1232_v56 = vpop.permute.xlu1 %1231  ;;  %v954_v5 = vpop.permute.xlu0 %953 }
 0x17f   : > { %v1554_v60 = vsel %vm1553_vm11, %v1521_v55, %v1232_v56  ;;  %v4791_v56 = vld [vmem:[#allocation54_spill] sm:$0xff] }
 0x180   : > { %895 = vrot.lane.b32.xlu1 %v4789_v27, %s2592_s5  ;;  %989 = vrot.lane.b32.xlu0 %v4790_v1, %s2593_s20 }
 0x181   : > { %2377 = vmatprep.mubr.msk.f32.mxu0 %vm1591_vm12, %v1554_v60  ;;  %v4793_v60 = vld [vmem:[#allocation55_spill] sm:$0xff] }
 0x182   : > { %v1234_v34 = vpop.permute.xlu1 %1233  ;;  %v956_v10 = vpop.permute.xlu0 %955 }
 0x183   : > { %v1555_v57 = vsel %vm1553_vm11, %v1522_v19, %v1234_v34 }
 0x184   : > { %1160 = vrot.lane.b32.xlu1 %v4739_v28, %s2595_s27  ;;  %1251 = vrot.lane.b32.xlu0 %v4791_v56, %s2596_s28  ;;  %v1358_v28 = vsel %vm1356_vm5, %v1326_v33, %v3358_v37  ;;  %v1359_v37 = vsel %vm1356_vm5, %v1327_v16, %v3371_v44  ;;  %v4797_v16 = vld [vmem:[#allocation60_spill] sm:$0xff] }
 0x185   : > { %2378 = vmatmul.mubr.msk.f32.vlgmr.msra.gmra.mrb[0].mxu0 %vm1591_vm12, %v1555_v57  ;;  %v1391_v50 = vsel %vm1388_vm6, %v1358_v28, %v3513_v38  ;;  %v4794_v57 = vld [vmem:[#allocation37_spill] sm:$0xff] }
 0x186   : > { %v1050_v27 = vpop.permute.xlu1 %1049  ;;  %v1052_v2 = vpop.permute.xlu0 %1051  ;;  %v1424_v18 = vsel %vm1421_vm7, %v1391_v50, %v3639_v45  ;;  %v1392_v45 = vsel %vm1388_vm6, %v1359_v37, %v3519_v59 }
 0x187   : > { %v1457_v24 = vsel %vm1454_vm8, %v1424_v18, %v954_v5  ;;  %v1425_v39 = vsel %vm1421_vm7, %v1392_v45, %v3645_v51 }
 0x188   : > { %1269 = vrot.lane.b32.xlu1 %v4792_v48, %s2596_s28  ;;  %973 = vrot.lane.b32.xlu0 %v4791_v56, %s2593_s20  ;;  %v1490_v38 = vsel %vm1487_vm9, %v1457_v24, %v1050_v27  ;;  %v1458_v36 = vsel %vm1454_vm8, %v1425_v39, %v956_v10  ;;  %v1328_v10 = vsel %vm1324_vm4, %v2695_v17, %v3243_v13 }
 0x189   : > { %v1491_v44 = vsel %vm1487_vm9, %v1458_v36, %v1052_v2  ;;  %v1360_v56 = vsel %vm1356_vm5, %v1328_v10, %v3373_v15  ;;  %v1329_v17 = vsel %vm1324_vm4, %v2701_v21, %v3245_v30  ;;  %v4795_v15 = vld [vmem:[#allocation97_spill] sm:$0xff] }
 0x18a   : > { %v1143_v8 = vpop.permute.xlu1 %1142  ;;  %v1145_v1 = vpop.permute.xlu0 %1144  ;;  %v1393_v27 = vsel %vm1388_vm6, %v1360_v56, %v3521_v62  ;;  %v1361_v62 = vsel %vm1356_vm5, %v1329_v17, %v4795_v15 }
 0x18b   : > { %v1523_v3 = vsel %vm1520_vm10, %v1490_v38, %v1143_v8  ;;  %v1524_v59 = vsel %vm1520_vm10, %v1491_v44, %v1145_v1  ;;  %v4801_v44 = vld [vmem:[#allocation98_spill] sm:$0xff] }
 0x18c   : > { %991 = vrot.lane.b32.xlu1 %v4792_v48, %s2593_s20  ;;  %1085 = vrot.lane.b32.xlu0 %v2931_v42, %s2594_s26  ;;  %v1426_v48 = vsel %vm1421_vm7, %v1393_v27, %v3647_v58  ;;  %v1394_v58 = vsel %vm1388_vm6, %v1361_v62, %v3527_v0  ;;  %v4803_v27 = vld [vmem:[#allocation69_spill] sm:$0xff] }
 0x18d   : > { %v1427_v30 = vsel %vm1421_vm7, %v1394_v58, %v3653_v53  ;;  %v4807_v58 = vld [vmem:[#allocation36_spill] sm:$0xff] }
 0x18e   : > { %v1236_v55 = vpop.permute.xlu1 %1235  ;;  %v958_v14 = vpop.permute.xlu0 %957 }
 0x18f   : > { %v1556_v5 = vsel %vm1553_vm11, %v1523_v3, %v1236_v55  ;;  %v1459_v13 = vsel %vm1454_vm8, %v1426_v48, %v958_v14  ;;  %v4798_v55 = vld [vmem:[#allocation56_spill] sm:$0xff] }
 0x190   : > { %1253 = vrot.lane.b32.xlu1 %v4793_v60, %s2596_s28  ;;  %975 = vrot.lane.b32.xlu0 %v4793_v60, %s2593_s20  ;;  %v4800_v60 = vld [vmem:[#allocation61_spill] sm:$0xff] }
 0x191   : > { %2380 = vmatprep.mubr.msk.f32.mxu0 %vm1591_vm12, %v1556_v5  ;;  %v4799_v5 = vld [vmem:[#allocation68_spill] sm:$0xff] }
 0x192   : > { %v1238_v40 = vpop.permute.xlu1 %1237  ;;  %v960_v7 = vpop.permute.xlu0 %959  ;;  %v1330_v36 = vsel %vm1324_vm4, %v2721_v31, %v4799_v5  ;;  %v4802_v31 = vld [vmem:[#allocation35_spill] sm:$0xff] }
 0x193   : > { %v1557_v51 = vsel %vm1553_vm11, %v1524_v59, %v1238_v40  ;;  %v1460_v18 = vsel %vm1454_vm8, %v1427_v30, %v960_v7  ;;  %v1362_v59 = vsel %vm1356_vm5, %v1330_v36, %v4801_v44 }
 0x194   : > { %1069 = vrot.lane.b32.xlu1 %v2826_v35, %s2594_s26  ;;  %1087 = vrot.lane.b32.xlu0 %v2937_v32, %s2594_s26 }
 0x195   : > { %2381 = vmatmul.mubr.msk.f32.gmra.mrb[2].mxu0 %vm1591_vm12, %v1557_v51 }
 0x196   : > { %v1054_v19 = vpop.permute.xlu1 %1053  ;;  %v1056_v34 = vpop.permute.xlu0 %1055 }
 0x197   : > { %v1492_v28 = vsel %vm1487_vm9, %v1459_v13, %v1054_v19  ;;  %v1493_v24 = vsel %vm1487_vm9, %v1460_v18, %v1056_v34 }
 0x198   : > { %1178 = vrot.lane.b32.xlu1 %v4794_v57, %s2595_s27  ;;  %897 = vrot.lane.b32.xlu0 %v4794_v57, %s2592_s5 }
 0x19a   : > { %v1147_v2 = vpop.permute.xlu1 %1146  ;;  %v1149_v33 = vpop.permute.xlu0 %1148 }
 0x19b   : > { %v1525_v50 = vsel %vm1520_vm10, %v1492_v28, %v1147_v2  ;;  %v1526_v0 = vsel %vm1520_vm10, %v1493_v24, %v1149_v33  ;;  %v4804_v2 = vld [vmem:[#allocation57_spill] sm:$0xff]  ;;  %v4805_v33 = vld [vmem:[#allocation99_spill] sm:$0xff]  ;;  %v4806_v28 = vld [vmem:[#allocation22_spill] sm:$0xff] }
 0x19c   : > { %1071 = vrot.lane.b32.xlu1 %v2835_v41, %s2594_s26  ;;  %1162 = vrot.lane.b32.xlu0 %v4740_v26, %s2595_s27  ;;  %v4796_v26 = vld [vmem:[#allocation38_spill] sm:$0xff] }
 0x19e   : > { %v1240_v8 = vpop.permute.xlu1 %1239  ;;  %v962_v21 = vpop.permute.xlu0 %961 }
 0x19f   : > { %v1558_v1 = vsel %vm1553_vm11, %v1525_v50, %v1240_v8 }
 0x1a0   : > { %1180 = vrot.lane.b32.xlu1 %v4796_v26, %s2595_s27  ;;  %1271 = vrot.lane.b32.xlu0 %v4797_v16, %s2596_s28 }
 0x1a1   : > { %2383 = vmatprep.mubr.msk.f32.mxu0 %vm1591_vm12, %v1558_v1  ;;  %v4808_v1 = vld [vmem:[#allocation41_spill] sm:$0xff] }
 0x1a2   : > { %v1242_v37 = vpop.permute.xlu1 %1241  ;;  %v964_v38 = vpop.permute.xlu0 %963 }
 0x1a3   : > { %v1559_v53 = vsel %vm1553_vm11, %v1526_v0, %v1242_v37  ;;  %v4810_v0 = vld [vmem:[#allocation78_spill] sm:$0xff] }
 0x1a4   : > { %899 = vrot.lane.b32.xlu1 %v4796_v26, %s2592_s5  ;;  %993 = vrot.lane.b32.xlu0 %v4797_v16, %s2593_s20  ;;  %v4809_v26 = vld [vmem:[#allocation21_spill] sm:$0xff]  ;;  %v1340_v37 = vsel %vm1324_vm4, %v2826_v35, %v4810_v0 }
 0x1a5   : > { %2384 = vmatmul.mubr.msk.f32.gmra.mrb[4].mxu0 %vm1591_vm12, %v1559_v53  ;;  %v4812_v53 = vld [vmem:[#allocation62_spill] sm:$0xff] }
 0x1a6   : > { %v1058_v45 = vpop.permute.xlu1 %1057  ;;  %v1060_v3 = vpop.permute.xlu0 %1059 }
 0x1a8   : > { %1164 = vrot.lane.b32.xlu1 %v4743_v43, %s2595_s27  ;;  %1255 = vrot.lane.b32.xlu0 %v4798_v55, %s2596_s28  ;;  %v1395_v43 = vsel %vm1388_vm6, %v1362_v59, %v3529_v54 }
 0x1a9   : > { %v1428_v51 = vsel %vm1421_vm7, %v1395_v43, %v3655_v11  ;;  %v1331_v11 = vsel %vm1324_vm4, %v2709_v25, %v4803_v27  ;;  %v4814_v43 = vld [vmem:[#allocation70_spill] sm:$0xff] }
 0x1aa   : > { %v1151_v14 = vpop.permute.xlu1 %1150  ;;  %v3834_v39 = vpop.permute.xlu0 %887  ;;  %v1461_v19 = vsel %vm1454_vm8, %v1428_v51, %v962_v21  ;;  %v1363_v48 = vsel %vm1356_vm5, %v1331_v11, %v4805_v33 }
 0x1ab   : > { %v1494_v34 = vsel %vm1487_vm9, %v1461_v19, %v1058_v45  ;;  %v1396_v17 = vsel %vm1388_vm6, %v1363_v48, %v3535_v63  ;;  %v4813_v45 = vld [vmem:[#allocation107_spill] sm:$0xff] }
 0x1ac   : > { %1273 = vrot.lane.b32.xlu1 %v4800_v60, %s2596_s28  ;;  %977 = vrot.lane.b32.xlu0 %v4798_v55, %s2593_s20  ;;  %v1527_v10 = vsel %vm1520_vm10, %v1494_v34, %v1151_v14  ;;  %v1429_v62 = vsel %vm1421_vm7, %v1396_v17, %v3661_v12  ;;  %v4819_v17 = vld [vmem:[#allocation40_spill] sm:$0xff] }
 0x1ad   : > { %v1462_v25 = vsel %vm1454_vm8, %v1429_v62, %v964_v38  ;;  %v4811_v38 = vld [vmem:[#allocation42_spill] sm:$0xff] }
 0x1ae   : > { %v982_v40 = vpop.permute.xlu1 %981  ;;  %v1153_v7 = vpop.permute.xlu0 %1152  ;;  %v1495_v50 = vsel %vm1487_vm9, %v1462_v25, %v1060_v3  ;;  %v1372_v3 = vsel %vm1356_vm5, %v1340_v37, %v4813_v45  ;;  %v4825_v37 = vld [vmem:[#allocation46_spill] sm:$0xff] }
 0x1af   : > { %v1528_v8 = vsel %vm1520_vm10, %v1495_v50, %v1153_v7  ;;  %v1405_v55 = vsel %vm1388_vm6, %v1372_v3, %v3569_v29  ;;  %v4820_v50 = vld [vmem:[#allocation71_spill] sm:$0xff] }
 0x1b0   : > { %995 = vrot.lane.b32.xlu1 %v4800_v60, %s2593_s20  ;;  %1089 = vrot.lane.b32.xlu0 %v4802_v31, %s2594_s26  ;;  %v1438_v5 = vsel %vm1421_vm7, %v1405_v55, %v3695_v52  ;;  %v1332_v52 = vsel %vm1324_vm4, %v2749_v47, %v4814_v43  ;;  %v4831_v43 = vld [vmem:[#allocation120_spill] sm:$0xff] }
 0x1b1   : > { %v1471_v36 = vsel %vm1454_vm8, %v1438_v5, %v982_v40  ;;  %v4815_v40 = vld [vmem:[#allocation100_spill] sm:$0xff] }
 0x1b2   : > { %v1244_v57 = vpop.permute.xlu1 %1243  ;;  %v966_v56 = vpop.permute.xlu0 %965  ;;  %v1364_v7 = vsel %vm1356_vm5, %v1332_v52, %v4815_v40 }
 0x1b3   : > { %v1560_v54 = vsel %vm1553_vm11, %v1527_v10, %v1244_v57  ;;  %v1397_v51 = vsel %vm1388_vm6, %v1364_v7, %v3537_v20  ;;  %v4816_v10 = vld [vmem:[#allocation79_spill] sm:$0xff] }
 0x1b4   : > { %1257 = vrot.lane.b32.xlu1 %v4804_v2, %s2596_s28  ;;  %979 = vrot.lane.b32.xlu0 %v4804_v2, %s2593_s20  ;;  %v1430_v47 = vsel %vm1421_vm7, %v1397_v51, %v3663_v9  ;;  %v4817_v57 = vld [vmem:[#allocation63_spill] sm:$0xff] }
 0x1b5   : > { %2386 = vmatprep.mubr.msk.f32.mxu0 %vm1591_vm12, %v1560_v54  ;;  %v4818_v54 = vld [vmem:[#allocation14_spill] sm:$0xff] }
 0x1b6   : > { %v984_v13 = vpop.permute.xlu1 %983  ;;  %v1078_v15 = vpop.permute.xlu0 %1077 }
 0x1b7   : > { %v1504_v35 = vsel %vm1487_vm9, %v1471_v36, %v1078_v15 }
 0x1b8   : > { %1073 = vrot.lane.b32.xlu1 %v4806_v28, %s2594_s26  ;;  %1091 = vrot.lane.b32.xlu0 %v4807_v58, %s2594_s26 }
 0x1ba   : > { %v1246_v21 = vpop.permute.xlu1 %1245  ;;  %v3878_v30 = vpop.permute.xlu0 %967 }
 0x1bb   : > { %v1561_v63 = vsel %vm1553_vm11, %v1528_v8, %v1246_v21  ;;  %v4821_v8 = vld [vmem:[#allocation39_spill] sm:$0xff]  ;;  %v4822_v21 = vld [vmem:[#allocation45_spill] sm:$0xff] }
 0x1bc   : > { %1182 = vrot.lane.b32.xlu1 %v4808_v1, %s2595_s27  ;;  %901 = vrot.lane.b32.xlu0 %v4808_v1, %s2592_s5  ;;  %v4824_v1 = vld [vmem:[#allocation50_spill] sm:$0xff] }
 0x1bd   : > { %2387 = vmatmul.mubr.msk.f32.gmra.mrb[6].mxu0 %vm1591_vm12, %v1561_v63 }
 0x1be   : > { %v1062_v12 = vpop.permute.xlu1 %1061  ;;  %v1080_v18 = vpop.permute.xlu0 %1079 }
 0x1c0   : > { %1075 = vrot.lane.b32.xlu1 %v4809_v26, %s2594_s26  ;;  %1166 = vrot.lane.b32.xlu0 %v4744_v61, %s2595_s27 }
 0x1c2   : > { %v1171_v16 = vpop.permute.xlu1 %1170  ;;  %v3890_v24 = vpop.permute.xlu0 %889 }
 0x1c3   : > { %v1537_v60 = vsel %vm1520_vm10, %v1504_v35, %v1171_v16  ;;  %v4828_v35 = vld [vmem:[#allocation80_spill] sm:$0xff] }
 0x1c4   : > { %1184 = vrot.lane.b32.xlu1 %v4811_v38, %s2595_s27  ;;  %1275 = vrot.lane.b32.xlu0 %v4812_v53, %s2596_s28 }
 0x1c6   : > { %v1064_v61 = vpop.permute.xlu1 %1063  ;;  %v1155_v14 = vpop.permute.xlu0 %1154 }
 0x1c8   : > { %903 = vrot.lane.b32.xlu1 %v4811_v38, %s2592_s5  ;;  %997 = vrot.lane.b32.xlu0 %v4812_v53, %s2593_s20 }
 0x1ca   : > { %v1173_v44 = vpop.permute.xlu1 %1172  ;;  %v1264_v59 = vpop.permute.xlu0 %1263 }
 0x1cb   : > { %v1570_v29 = vsel %vm1553_vm11, %v1537_v60, %v1264_v59  ;;  %v1342_v60 = vsel %vm1324_vm4, %v4806_v28, %v4828_v35  ;;  %v4830_v59 = vld [vmem:[#allocation17_spill] sm:$0xff]  ;;  %v4832_v28 = vld [vmem:[#allocation43_spill] sm:$0xff] }
 0x1cc   : > { %1168 = vrot.lane.b32.xlu1 %v4766_v22, %s2595_s27  ;;  %1259 = vrot.lane.b32.xlu0 %v3149_v49, %s2596_s28  ;;  %v1341_v22 = vsel %vm1324_vm4, %v2835_v41, %v4816_v10  ;;  %v1463_v49 = vsel %vm1454_vm8, %v1430_v47, %v966_v56  ;;  %v4833_v10 = vld [vmem:[#allocation47_spill] sm:$0xff] }
 0x1cd   : > { %2401 = vmatprep.mubr.msk.f32.mxu1 %vm1591_vm12, %v1570_v29  ;;  %v1373_v20 = vsel %vm1356_vm5, %v1341_v22, %v4818_v54  ;;  %v1496_v27 = vsel %vm1487_vm9, %v1463_v49, %v1062_v12  ;;  %v1374_v29 = vsel %vm1356_vm5, %v1342_v60, %v4830_v59 }
 0x1ce   : > { %v3925_v19 = vpop.permute.xlu1 %891  ;;  %v986_v34 = vpop.permute.xlu0 %985  ;;  %v1406_v9 = vsel %vm1388_vm6, %v1373_v20, %v3575_v4  ;;  %v1529_v11 = vsel %vm1520_vm10, %v1496_v27, %v1155_v14  ;;  %v1407_v52 = vsel %vm1388_vm6, %v1374_v29, %v4831_v43  ;;  %v4834_v27 = vld [vmem:[#allocation72_spill] sm:$0xff]  ;;  %v4849_v29 = vld [vmem:[#allocation73_spill] sm:$0xff] }
 0x1cf   : > { %v1439_v56 = vsel %vm1421_vm7, %v1406_v9, %v3834_v39  ;;  %v1440_v51 = vsel %vm1421_vm7, %v1407_v52, %v3890_v24  ;;  %v4835_v9 = vld [vmem:[#allocation10_spill] sm:$0xff]  ;;  %v4850_v43 = vld [vmem:[#allocation9_spill] sm:$0xff] }
 0x1d0   : > { %1277 = vrot.lane.b32.xlu1 %v4817_v57, %s2596_s28  ;;  %999 = vrot.lane.b32.xlu0 %v4817_v57, %s2593_s20  ;;  %v1472_v48 = vsel %vm1454_vm8, %v1439_v56, %v984_v13  ;;  %v1333_v13 = vsel %vm1324_vm4, %v2746_v46, %v4820_v50  ;;  %v1473_v47 = vsel %vm1454_vm8, %v1440_v51, %v986_v34  ;;  %v4836_v34 = vld [vmem:[#allocation48_spill] sm:$0xff] }
 0x1d1   : > { %v1505_v15 = vsel %vm1487_vm9, %v1472_v48, %v1080_v18  ;;  %v1334_v24 = vsel %vm1324_vm4, %v4835_v9, %v4834_v27  ;;  %v1335_v52 = vsel %vm1324_vm4, %v4850_v43, %v4849_v29 }
 0x1d2   : > { %v1157_v2 = vpop.permute.xlu1 %1156  ;;  %v1248_v41 = vpop.permute.xlu0 %1247  ;;  %v1538_v4 = vsel %vm1520_vm10, %v1505_v15, %v1173_v44  ;;  %v4829_v44 = vld [vmem:[#allocation44_spill] sm:$0xff]  ;;  %v4839_v15 = vld [vmem:[#allocation31_spill] sm:$0xff] }
 0x1d3   : > { %v1562_v33 = vsel %vm1553_vm11, %v1529_v11, %v1248_v41  ;;  %v4837_v11 = vld [vmem:[#allocation102_spill] sm:$0xff]  ;;  %v4838_v41 = vld [vmem:[#allocation115_spill] sm:$0xff] }
 0x1d4   : > { %1093 = vrot.lane.b32.xlu1 %v4819_v17, %s2594_s26  ;;  %1261 = vrot.lane.b32.xlu0 %v3160_v23, %s2596_s28  ;;  %v4823_v23 = vld [vmem:[#allocation101_spill] sm:$0xff] }
 0x1d5   : > { %2389 = vmatprep.mubr.msk.f32.mxu0 %vm1591_vm12, %v1562_v33  ;;  %v1365_v63 = vsel %vm1356_vm5, %v1333_v13, %v4823_v23  ;;  %v4841_v13 = vld [vmem:[#allocation66_spill] sm:$0xff] }
 0x1d6   : > { %v1266_v62 = vpop.permute.xlu1 %1265  ;;  %v970_v25 = vpop.permute.xlu0 %969  ;;  %v1398_v12 = vsel %vm1388_vm6, %v1365_v63, %v4824_v1  ;;  %v4843_v1 = vld [vmem:[#allocation121_spill] sm:$0xff] }
 0x1d7   : > { %v1571_v39 = vsel %vm1553_vm11, %v1538_v4, %v1266_v62  ;;  %v1431_v0 = vsel %vm1421_vm7, %v1398_v12, %v3669_v6  ;;  %v4826_v6 = vld [vmem:[#allocation64_spill] sm:$0xff]  ;;  %v4840_v62 = vld [vmem:[#allocation81_spill] sm:$0xff] }
 0x1d8   : > { %1095 = vrot.lane.b32.xlu1 %v4821_v8, %s2594_s26  ;;  %1186 = vrot.lane.b32.xlu0 %v4822_v21, %s2595_s27  ;;  %v1464_v46 = vsel %vm1454_vm8, %v1431_v0, %v3878_v30 }
 0x1d9   : > { %2402 = vmatmul.mubr.msk.f32.vlgmr.msra.gmra.mrb[0].mxu1 %vm1591_vm12, %v1571_v39  ;;  %v1497_v38 = vsel %vm1487_vm9, %v1464_v46, %v1064_v61  ;;  %v4827_v61 = vld [vmem:[#allocation65_spill] sm:$0xff]  ;;  %v1343_v39 = vsel %vm1324_vm4, %v4809_v26, %v4840_v62 }
 0x1da   : > { %v988_v18 = vpop.permute.xlu1 %987  ;;  %v1082_v16 = vpop.permute.xlu0 %1081  ;;  %v1530_v53 = vsel %vm1520_vm10, %v1497_v38, %v1157_v2  ;;  %v1366_v2 = vsel %vm1356_vm5, %v1334_v24, %v4837_v11  ;;  %v4844_v38 = vld [vmem:[#allocation67_spill] sm:$0xff] }
 0x1db   : > { %v1506_v22 = vsel %vm1487_vm9, %v1473_v47, %v1082_v16  ;;  %v1399_v56 = vsel %vm1388_vm6, %v1366_v2, %v4838_v41 }
 0x1dc   : > { %905 = vrot.lane.b32.xlu1 %v4822_v21, %s2592_s5  ;;  %1188 = vrot.lane.b32.xlu0 %v4825_v37, %s2595_s27  ;;  %v1432_v4 = vsel %vm1421_vm7, %v1399_v56, %v4839_v15  ;;  %v4842_v21 = vld [vmem:[#allocation18_spill] sm:$0xff] }
 0x1dd   : > { %v1465_v50 = vsel %vm1454_vm8, %v1432_v4, %v970_v25  ;;  %v1375_v23 = vsel %vm1356_vm5, %v1343_v39, %v4842_v21  ;;  %v4854_v21 = vld [vmem:[#allocation82_spill] sm:$0xff] }
 0x1de   : > { %v1250_v45 = vpop.permute.xlu1 %1249  ;;  %v3977_v3 = vpop.permute.xlu0 %971  ;;  %v1408_v12 = vsel %vm1388_vm6, %v1375_v23, %v4843_v1  ;;  %v4855_v23 = vld [vmem:[#allocation26_spill] sm:$0xff]  ;;  %v4856_v1 = vld [vmem:[#allocation19_spill] sm:$0xff] }
 0x1df   : > { %v1563_v55 = vsel %vm1553_vm11, %v1530_v53, %v1250_v45  ;;  %v1441_v25 = vsel %vm1421_vm7, %v1408_v12, %v3925_v19  ;;  %v4845_v53 = vld [vmem:[#allocation95_spill] sm:$0xff] }
 0x1e0   : > { %1279 = vrot.lane.b32.xlu1 %v4826_v6, %s2596_s28  ;;  %907 = vrot.lane.b32.xlu0 %v4825_v37, %s2592_s5  ;;  %v1474_v37 = vsel %vm1454_vm8, %v1441_v25, %v988_v18  ;;  %v561_v45 = vrot.slane %v4845_v53, 1  ;;  %v4847_v18 = vld [vmem:[#allocation94_spill] sm:$0xff]  ;;  %v566_v9 = vrot.slane %v4845_v53, 2 }
 0x1e1   : > { %2390 = vmatmul.mubr.msk.f32.gmra.mrb[8].mxu0 %vm1591_vm12, %v1563_v55  ;;  %v4846_v55 = vld [vmem:[#allocation96_spill] sm:$0xff]  ;;  %v4848_v35 = vrot.slane %v4847_v18, 7 }
 0x1e2   : > { %v1066_v30 = vpop.permute.xlu1 %1065  ;;  %v1084_v14 = vpop.permute.xlu0 %1083  ;;  %v567_v24 = vrot.slane %v4846_v55, 2  ;;  %v4861_v18 = vld [vmem:[#allocation8_spill] sm:$0xff] }
 0x1e3   : > { %v1498_v63 = vsel %vm1487_vm9, %v1465_v50, %v1066_v30  ;;  %v1507_v30 = vsel %vm1487_vm9, %v1474_v37, %v1084_v14  ;;  %v371_v60 = vsel %vm244_vm0, %v4848_v35, 0.0  ;;  %v4851_v14 = vld [vmem:[#allocation103_spill] sm:$0xff] }
 0x1e4   : > { %1001 = vrot.lane.b32.xlu1 %v4826_v6, %s2593_s20  ;;  %1281 = vrot.lane.b32.xlu0 %v4827_v61, %s2596_s28  ;;  %v562_v6 = vrot.slane %v4846_v55, 1  ;;  %v564_v47 = vrot.slane %v371_v60, 1  ;;  %v568_v15 = vsel %vm481_vm2, %v566_v9, %v567_v24  ;;  %v569_v4 = vrot.slane %v371_v60, 2  ;;  %v4863_v60 = vld [vmem:[#allocation49_spill] sm:$0xff] }
 0x1e6   : > { %v1175_v5 = vpop.permute.xlu1 %1174  ;;  %v3989_v36 = vpop.permute.xlu0 %893  ;;  %v563_v51 = vsel %vm403_vm1, %v561_v45, %v562_v6  ;;  %v565_v11 = vsel %vm403_vm1, %v562_v6, %v564_v47  ;;  %v570_v39 = vsel %vm481_vm2, %v567_v24, %v569_v4  ;;  %v4867_v47 = vld [vmem:[#allocation25_spill] sm:$0xff] }
 0x1e7   : > { %v1539_v49 = vsel %vm1520_vm10, %v1506_v22, %v1175_v5 }
 0x1e8   : > { %1003 = vrot.lane.b32.xlu1 %v4827_v61, %s2593_s20  ;;  %1097 = vrot.lane.b32.xlu0 %v4829_v44, %s2594_s26 }
 0x1ea   : > { %v1068_v40 = vpop.permute.xlu1 %1067  ;;  %v1159_v7 = vpop.permute.xlu0 %1158 }
 0x1eb   : > { %v1531_v16 = vsel %vm1520_vm10, %v1498_v63, %v1159_v7  ;;  %v1367_v7 = vsel %vm1356_vm5, %v1335_v52, %v4851_v14  ;;  %v1344_v63 = vsel %vm1324_vm4, %v4855_v23, %v4854_v21  ;;  %v4865_v14 = vld [vmem:[#allocation53_spill] sm:$0xff]  ;;  %v4871_v21 = vld [vmem:[#allocation12_spill] sm:$0xff] }
 0x1ec   : > { %1099 = vrot.lane.b32.xlu1 %v4832_v28, %s2594_s26  ;;  %1190 = vrot.lane.b32.xlu0 %v4833_v10, %s2595_s27  ;;  %v1376_v12 = vsel %vm1356_vm5, %v1344_v63, %v4856_v1 }
 0x1ee   : > { %v1177_v57 = vpop.permute.xlu1 %1176  ;;  %v1268_v54 = vpop.permute.xlu0 %1267 }
 0x1ef   : > { %v1572_v20 = vsel %vm1553_vm11, %v1539_v49, %v1268_v54  ;;  %v1540_v19 = vsel %vm1520_vm10, %v1507_v30, %v1177_v57  ;;  %v4853_v54 = vld [vmem:[#allocation32_spill] sm:$0xff] }
 0x1f0   : > { %909 = vrot.lane.b32.xlu1 %v4833_v10, %s2592_s5  ;;  %1192 = vrot.lane.b32.xlu0 %v4836_v34, %s2595_s27  ;;  %v4852_v10 = vld [vmem:[#allocation116_spill] sm:$0xff] }
 0x1f1   : > { %2404 = vmatprep.mubr.msk.f32.mxu1 %vm1591_vm12, %v1572_v20  ;;  %v1400_v22 = vsel %vm1388_vm6, %v1367_v7, %v4852_v10 }
 0x1f2   : > { %v4024_v33 = vpop.permute.xlu1 %895  ;;  %v4026_v48 = vpop.permute.xlu0 %989  ;;  %v1433_v20 = vsel %vm1421_vm7, %v1400_v22, %v4853_v54 }
 0x1f3   : > { %v1466_v27 = vsel %vm1454_vm8, %v1433_v20, %v3977_v3 }
 0x1f4   : > { %1283 = vrot.lane.b32.xlu1 %v4841_v13, %s2596_s28  ;;  %911 = vrot.lane.b32.xlu0 %v4836_v34, %s2592_s5  ;;  %v1499_v34 = vsel %vm1487_vm9, %v1466_v27, %v1068_v40  ;;  %v4869_v27 = vld [vmem:[#allocation28_spill] sm:$0xff] }
 0x1f6   : > { %v1161_v0 = vpop.permute.xlu1 %1160  ;;  %v1252_v26 = vpop.permute.xlu0 %1251 }
 0x1f7   : > { %v1564_v46 = vsel %vm1553_vm11, %v1531_v16, %v1252_v26  ;;  %v1532_v2 = vsel %vm1520_vm10, %v1499_v34, %v1161_v0  ;;  %v4857_v16 = vld [vmem:[#allocation122_spill] sm:$0xff] }
 0x1f8   : > { %1005 = vrot.lane.b32.xlu1 %v4841_v13, %s2593_s20  ;;  %1285 = vrot.lane.b32.xlu0 %v4844_v38, %s2596_s28  ;;  %v1409_v0 = vsel %vm1388_vm6, %v1376_v12, %v4857_v16  ;;  %v4874_v16 = vld [vmem:[#allocation132_spill] sm:$0xff] }
 0x1f9   : > { %2392 = vmatprep.mubr.msk.f32.mxu0 %vm1591_vm12, %v1564_v46  ;;  %v1442_v46 = vsel %vm1421_vm7, %v1409_v0, %v3989_v36 }
 0x1fa   : > { %v1270_v61 = vpop.permute.xlu1 %1269  ;;  %v4057_v5 = vpop.permute.xlu0 %973  ;;  %v1475_v37 = vsel %vm1454_vm8, %v1442_v46, %v4026_v48  ;;  %v4862_v48 = vld [vmem:[#allocation104_spill] sm:$0xff] }
 0x1fb   : > { %v1573_v59 = vsel %vm1553_vm11, %v1540_v19, %v1270_v61  ;;  %v4859_v19 = vld [vmem:[#allocation74_spill] sm:$0xff]  ;;  %v4860_v61 = vld [vmem:[#allocation11_spill] sm:$0xff] }
 0x1fc   : > { %1007 = vrot.lane.b32.xlu1 %v4844_v38, %s2593_s20  ;;  %1101 = vrot.lane.b32.xlu0 %v4845_v53, %s2594_s26  ;;  %v4858_v38 = vmov 0.0   ;;  %v1336_v36 = vsel %vm1324_vm4, %v4860_v61, %v4859_v19  ;;  %v4875_v61 = vld [vmem:[#allocation84_spill] sm:$0xff] }
 0x1fd   : > { %2405 = vmatmul.mubr.msk.f32.gmra.mrb[2].mxu1 %vm1591_vm12, %v1573_v59  ;;  %v1368_v35 = vsel %vm1356_vm5, %v1336_v36, %v4862_v48  ;;  %v4864_v59 = vld [vmem:[#allocation117_spill] sm:$0xff]  ;;  %v4877_v48 = vld [vmem:[#allocation23_spill] sm:$0xff] }
 0x1fe   : > { %v992_v49 = vpop.permute.xlu1 %991  ;;  %v1086_v57 = vpop.permute.xlu0 %1085  ;;  %v1401_v29 = vsel %vm1388_vm6, %v1368_v35, %v4864_v59  ;;  %v4876_v36 = vld [vmem:[#allocation29_spill] sm:$0xff] }
 0x1ff   : > { %v1508_v53 = vsel %vm1487_vm9, %v1475_v37, %v1086_v57  ;;  %v1434_v7 = vsel %vm1421_vm7, %v1401_v29, %v4865_v14  ;;  %v4868_v57 = vld [vmem:[#allocation20_spill] sm:$0xff] }
 0x200   : > { %1103 = vrot.lane.b32.xlu1 %v4846_v55, %s2594_s26  ;;  %1194 = vrot.lane.b32.xlu0 %v563_v51, %s2595_s27  ;;  %v1467_v22 = vsel %vm1454_vm8, %v1434_v7, %v4057_v5 }
 0x202   : > { %v1254_v41 = vpop.permute.xlu1 %1253  ;;  %v4088_v56 = vpop.permute.xlu0 %975 }
 0x203   : > { %v1565_v3 = vsel %vm1553_vm11, %v1532_v2, %v1254_v41 }
 0x204   : > { %913 = vrot.lane.b32.xlu1 %v563_v51, %s2592_s5  ;;  %1196 = vrot.lane.b32.xlu0 %v565_v11, %s2595_s27  ;;  %v4866_v51 = vld [vmem:[#allocation83_spill] sm:$0xff] }
 0x205   : > { %2393 = vmatmul.mubr.msk.f32.gmra.mrb[10].mxu0 %vm1591_vm12, %v1565_v3  ;;  %v1345_v10 = vsel %vm1324_vm4, %v4867_v47, %v4866_v51 }
 0x206   : > { %v1070_v62 = vpop.permute.xlu1 %1069  ;;  %v1088_v40 = vpop.permute.xlu0 %1087  ;;  %v1377_v54 = vsel %vm1356_vm5, %v1345_v10, %v4868_v57  ;;  %v4879_v57 = vld [vmem:[#allocation76_spill] sm:$0xff] }
 0x207   : > { %v1500_v20 = vsel %vm1487_vm9, %v1467_v22, %v1070_v62  ;;  %v1410_v9 = vsel %vm1388_vm6, %v1377_v54, %v4869_v27  ;;  %v4880_v54 = vld [vmem:[#allocation15_spill] sm:$0xff]  ;;  %v4881_v27 = vld [vmem:[#allocation106_spill] sm:$0xff] }
 0x208   : > { %1287 = vrot.lane.b32.xlu1 %v568_v15, %s2596_s28  ;;  %915 = vrot.lane.b32.xlu0 %v565_v11, %s2592_s5  ;;  %v1443_v2 = vsel %vm1421_vm7, %v1410_v9, %v4024_v33  ;;  %v4872_v33 = vld [vmem:[#allocation105_spill] sm:$0xff]  ;;  %s2285_s5 = sshll.u32 %s4416_s29, 1 }
 0x209   : > { %v1476_v3 = vsel %vm1454_vm8, %v1443_v2, %v992_v49  ;;  %v4873_v49 = vld [vmem:[#allocation118_spill] sm:$0xff]  ;;  %s174_s7 = scalar_lea.vmem [#allocation4], %s2285_s5 }
 0x20a   : > { %v1179_v50 = vpop.permute.xlu1 %1178  ;;  %v4098_v13 = vpop.permute.xlu0 %897  ;;  %v1509_v5 = vsel %vm1487_vm9, %v1476_v3, %v1088_v40  ;;  %v4885_v3 = vld [vmem:[#allocation30_spill] sm:$0xff]  ;;  %s2189_s8 = sshll.u32 %s174_s7, 4  ;;  %s4432_s8 = int_to_ptr.vmem [resolvable:$true] %s2189_s8 }
 0x20b   : > { %v1541_v45 = vsel %vm1520_vm10, %v1508_v53, %v1179_v50  ;;  %v4870_v50 = vld [vmem:[#allocation75_spill] sm:$0xff]  ;;  %s2492_s19 = scalar_lea.vmem %s4432_s8, 32 }
 0x20c   : > { %1009 = vrot.lane.b32.xlu1 %v568_v15, %s2593_s20  ;;  %1289 = vrot.lane.b32.xlu0 %v570_v39, %s2596_s28  ;;  %v1337_v23 = vsel %vm1324_vm4, %v4871_v21, %v4870_v50  ;;  %v4887_v21 = vld [vmem:[#allocation124_spill] sm:$0xff]  ;;  %p2493_p11 = scmp.ne.s32.totalorder %s4432_s8, %s2492_s19 }
 0x20d   : > { %v1369_v63 = vsel %vm1356_vm5, %v1337_v23, %v4872_v33 }
 0x20e   : > { %v1072_v26 = vpop.permute.xlu1 %1071  ;;  %v1163_v25 = vpop.permute.xlu0 %1162  ;;  %v1402_v1 = vsel %vm1388_vm6, %v1369_v63, %v4873_v49  ;;  %p2494_p12 = pnand %p2493_p11, %p2657_p5 }
 0x20f   : > { %v1533_v24 = vsel %vm1520_vm10, %v1500_v20, %v1163_v25  ;;  %v1435_v0 = vsel %vm1421_vm7, %v1402_v1, %v4874_v16  ;;  %v1338_v20 = vsel %vm1324_vm4, %v4880_v54, %v4879_v57  ;;  %v4888_v16 = vld [vmem:[#allocation77_spill] sm:$0xff] }
 0x210   : > { %1011 = vrot.lane.b32.xlu1 %v570_v39, %s2593_s20  ;;  %1105 = vrot.lane.b32.xlu0 %v4858_v38, %s2594_s26  ;;  %v1468_v25 = vsel %vm1454_vm8, %v1435_v0, %v4088_v56  ;;  %v1370_v9 = vsel %vm1356_vm5, %v1338_v20, %v4881_v27  ;;  %v4889_v0 = vld [vmem:[#allocation16_spill] sm:$0xff]  ;;  %v4896_v20 = vld [vmem:[#allocation87_spill] sm:$0xff]  ;;  %p2495_p13 = pneg %p2494_p12  ;;  %s2597_s20 = smov [#allocation4]  }
 0x211   : > { %v1501_v46 = vsel %vm1487_vm9, %v1468_v25, %v1072_v26  ;;  %v4878_v26 = vld [vmem:[#allocation123_spill] sm:$0xff]  ;;  %v1349_v27 = vsel %vm1324_vm4, %v2937_v32, %v4896_v20  ;;  %s2496_s24 = sshll.u32 %s2597_s20, 4  ;;  %s2497_s24 = int_to_ptr.vmem [resolvable:$false] %s2496_s24 }
 0x212   : > { %v1181_v55 = vpop.permute.xlu1 %1180  ;;  %v1272_v6 = vpop.permute.xlu0 %1271  ;;  %s2498_s25 = scalar_lea.vmem %s2497_s24, 64  ;;  %p2499_p0 = scmp.lt.s32.totalorder %s4432_s8, %s2497_s24 }
 0x213   : > { %v1574_v30 = vsel %vm1553_vm11, %v1541_v45, %v1272_v6  ;;  %v1542_v15 = vsel %vm1520_vm10, %v1509_v5, %v1181_v55  ;;  %p2500_p1 = scmp.lt.s32.totalorder %s2498_s25, %s2492_s19 }
 0x214   : > { %1198 = vrot.lane.b32.xlu1 %v4861_v18, %s2595_s27  ;;  %2407 = vmatprep.mubr.msk.f32.mxu1 %vm1591_vm12, %v1574_v30  ;;  %v1346_v18 = vsel %vm1324_vm4, %v4876_v36, %v4875_v61  ;;  %v4892_v36 = vld [vmem:[#allocation134_spill] sm:$0xff] }
 0x215   : > { %1291 = vrot.lane.b32.xlu0 %v4863_v60, %s2596_s28  ;;  %v1378_v56 = vsel %vm1356_vm5, %v1346_v18, %v4877_v48  ;;  %p2501_p2 = por %p2500_p1, %p2499_p0 }
 0x216   : > { %v4131_v43 = vpop.permute.xlu1 %899  ;;  %v994_v52 = vpop.permute.xlu0 %993  ;;  %v1411_v35 = vsel %vm1388_vm6, %v1378_v56, %v4878_v26 }
 0x217   : > { %v1444_v29 = vsel %vm1421_vm7, %v1411_v35, %v4098_v13  ;;  %v4882_v13 = vld [vmem:[#allocation119_spill] sm:$0xff]  ;;  %p2502_p3 = pnand %p2501_p2, %p2495_p13 }
 0x218   : > { %v1477_v14 = vsel %vm1454_vm8, %v1444_v29, %v994_v52  ;;  %v1403_v52 = vsel %vm1388_vm6, %v1370_v9, %v4882_v13  ;;  %v4897_v13 = vld [vmem:[#allocation108_spill] sm:$0xff] }
 0x21a   : > { %v1165_v34 = vpop.permute.xlu1 %1164  ;;  %v1256_v11 = vpop.permute.xlu0 %1255 }
 0x21b   : > { %v1566_v41 = vsel %vm1553_vm11, %v1533_v24, %v1256_v11  ;;  %v1534_v37 = vsel %vm1520_vm10, %v1501_v46, %v1165_v34  ;;  %v4883_v11 = vld [vmem:[#allocation133_spill] sm:$0xff] }
 0x21c   : > { %2395 = vmatprep.mubr.msk.f32.mxu0 %vm1591_vm12, %v1566_v41  ;;  %v1436_v2 = vsel %vm1421_vm7, %v1403_v52, %v4883_v11  ;;  %v4884_v41 = vld [vmem:[#allocation85_spill] sm:$0xff]  ;;  %v1381_v52 = vsel %vm1356_vm5, %v1349_v27, %v4897_v13  ;;  %v4898_v11 = vld [vmem:[#allocation52_spill] sm:$0xff] }
 0x21d   : > { %v1347_v5 = vsel %vm1324_vm4, %v4885_v3, %v4884_v41  ;;  %v4890_v46 = vld [vmem:[#allocation13_spill] sm:$0xff] }
 0x21e   : > { %v1274_v4 = vpop.permute.xlu1 %1273  ;;  %v978_v62 = vpop.permute.xlu0 %977 }
 0x21f   : > { %v1575_v39 = vsel %vm1553_vm11, %v1542_v15, %v1274_v4  ;;  %v1469_v15 = vsel %vm1454_vm8, %v1436_v2, %v978_v62  ;;  %v4886_v4 = vld [vmem:[#allocation24_spill] sm:$0xff]  ;;  %v1339_v62 = vsel %vm1324_vm4, %v4889_v0, %v4888_v16  ;;  %v1414_v2 = vsel %vm1388_vm6, %v1381_v52, %v4898_v11 }
 0x220   : > { %2408 = vmatmul.mubr.msk.f32.gmra.mrb[4].mxu1 %vm1591_vm12, %v1575_v39  ;;  %v1379_v39 = vsel %vm1356_vm5, %v1347_v5, %v4886_v4 }
 0x221   : > { %v1412_v23 = vsel %vm1388_vm6, %v1379_v39, %v4887_v21 }
 0x222   : > { %v996_v12 = vpop.permute.xlu1 %995  ;;  %v1090_v40 = vpop.permute.xlu0 %1089  ;;  %v1445_v1 = vsel %vm1421_vm7, %v1412_v23, %v4131_v43 }
 0x223   : > { %v1510_v7 = vsel %vm1487_vm9, %v1477_v14, %v1090_v40  ;;  %v1478_v25 = vsel %vm1454_vm8, %v1445_v1, %v996_v12 }
 0x226   : > { %v1258_v38 = vpop.permute.xlu1 %1257  ;;  %v980_v53 = vpop.permute.xlu0 %979 }
 0x227   : > { %v1567_v45 = vsel %vm1553_vm11, %v1534_v37, %v1258_v38  ;;  %v1371_v37 = vsel %vm1356_vm5, %v1339_v62, %v4890_v46 }
 0x228   : > { %2396 = vmatmul.mubr.msk.f32.gmra.mrb[12].mxu0 %vm1591_vm12, %v1567_v45  ;;  %v4891_v45 = vld [vmem:[#allocation51_spill] sm:$0xff] }
 0x22a   : > { %v1074_v55 = vpop.permute.xlu1 %1073  ;;  %v1092_v6 = vpop.permute.xlu0 %1091 }
 0x22b   : > { %v1502_v50 = vsel %vm1487_vm9, %v1469_v15, %v1074_v55  ;;  %v1511_v38 = vsel %vm1487_vm9, %v1478_v25, %v1092_v6  ;;  %v1404_v55 = vsel %vm1388_vm6, %v1371_v37, %v4891_v45  ;;  %v4899_v45 = vld [vmem:[#allocation88_spill] sm:$0xff] }
 0x22c   : > { %v1437_v18 = vsel %vm1421_vm7, %v1404_v55, %v4892_v36  ;;  %v1350_v55 = vsel %vm1324_vm4, %v4802_v31, %v4899_v45 }
 0x22d   : > { %v1470_v12 = vsel %vm1454_vm8, %v1437_v18, %v980_v53 }
 0x22e   : > { %v1183_v30 = vpop.permute.xlu1 %1182  ;;  %v902_v19 = vpop.permute.xlu0 %901 }
 0x22f   : > { %v1543_v51 = vsel %vm1520_vm10, %v1510_v7, %v1183_v30  ;;  %v4893_v7 = vld [vmem:[#allocation86_spill] sm:$0xff] }
 0x232   : > { %v1076_v60 = vpop.permute.xlu1 %1075  ;;  %v1167_v59 = vpop.permute.xlu0 %1166 }
 0x233   : > { %v1535_v33 = vsel %vm1520_vm10, %v1502_v50, %v1167_v59  ;;  %v1503_v56 = vsel %vm1487_vm9, %v1470_v12, %v1076_v60 }
 0x236   : > { %v1185_v47 = vpop.permute.xlu1 %1184  ;;  %v1276_v10 = vpop.permute.xlu0 %1275 }
 0x237   : > { %v1576_v22 = vsel %vm1553_vm11, %v1543_v51, %v1276_v10  ;;  %v1544_v43 = vsel %vm1520_vm10, %v1511_v38, %v1185_v47  ;;  %v1348_v51 = vsel %vm1324_vm4, %v2931_v42, %v4893_v7  ;;  %v4894_v47 = vld [vmem:[#allocation27_spill] sm:$0xff]  ;;  %v4895_v10 = vld [vmem:[#allocation125_spill] sm:$0xff] }
 0x238   : > { %2410 = vmatprep.mubr.msk.f32.mxu1 %vm1591_vm12, %v1576_v22  ;;  %v1380_v53 = vsel %vm1356_vm5, %v1348_v51, %v4894_v47 }
 0x239   : > { %v1413_v60 = vsel %vm1388_vm6, %v1380_v53, %v4895_v10 }
 0x23a   : > { %v904_v24 = vpop.permute.xlu1 %903  ;;  %v998_v34 = vpop.permute.xlu0 %997  ;;  %v1446_v54 = vsel %vm1421_vm7, %v1413_v60, %v902_v19 }
 0x23b   : > { %v1479_v9 = vsel %vm1454_vm8, %v1446_v54, %v998_v34  ;;  %v1447_v19 = vsel %vm1421_vm7, %v1414_v2, %v904_v24 }
 0x23e   : > { %v1169_v63 = vpop.permute.xlu1 %1168  ;;  %v1260_v49 = vpop.permute.xlu0 %1259 }
 0x23f   : > { %v1568_v40 = vsel %vm1553_vm11, %v1535_v33, %v1260_v49  ;;  %v1536_v6 = vsel %vm1520_vm10, %v1503_v56, %v1169_v63  ;;  %v4902_v56 = vld [vmem:[#allocation89_spill] sm:$0xff] }
 0x240   : > { %2398 = vmatprep.mubr.msk.f32.mxu0 %vm1591_vm12, %v1568_v40 }
 0x242   : > { %v1278_v30 = vpop.permute.xlu1 %1277  ;;  %v1000_v61 = vpop.permute.xlu0 %999 }
 0x243   : > { %v1577_v48 = vsel %vm1553_vm11, %v1544_v43, %v1278_v30  ;;  %v1480_v32 = vsel %vm1454_vm8, %v1447_v19, %v1000_v61  ;;  %v4900_v43 = vld [vmem:[#allocation109_spill] sm:$0xff]  ;;  %v4901_v61 = vld [vmem:[#allocation126_spill] sm:$0xff] }
 0x244   : > { %2411 = vmatmul.mubr.msk.f32.gmra.mrb[6].mxu1 %vm1591_vm12, %v1577_v48  ;;  %v1382_v30 = vsel %vm1356_vm5, %v1350_v55, %v4900_v43 }
 0x245   : > { %v1415_v36 = vsel %vm1388_vm6, %v1382_v30, %v4901_v61 }
 0x246   : > { %v1094_v26 = vpop.permute.xlu1 %1093  ;;  %v1262_v35 = vpop.permute.xlu0 %1261 }
 0x247   : > { %v1569_v59 = vsel %vm1553_vm11, %v1536_v6, %v1262_v35  ;;  %v1512_v42 = vsel %vm1487_vm9, %v1479_v9, %v1094_v26  ;;  %v1351_v6 = vsel %vm1324_vm4, %v4807_v58, %v4902_v56  ;;  %v4903_v35 = vld [vmem:[#allocation110_spill] sm:$0xff] }
 0x248   : > { %2399 = vmatmul.mubr.msk.f32.gmra.mrb[14].mxu0 %vm1591_vm12, %v1569_v59  ;;  %v1383_v59 = vsel %vm1356_vm5, %v1351_v6, %v4903_v35 }
 0x24a   : > { %v1096_v29 = vpop.permute.xlu1 %1095  ;;  %v1187_v14 = vpop.permute.xlu0 %1186 }
 0x24b   : > { %v1545_v41 = vsel %vm1520_vm10, %v1512_v42, %v1187_v14  ;;  %v1513_v34 = vsel %vm1487_vm9, %v1480_v32, %v1096_v29  ;;  %v4904_v29 = vld [vmem:[#allocation127_spill] sm:$0xff] }
 0x24c   : > { %v1416_v14 = vsel %vm1388_vm6, %v1383_v59, %v4904_v29 }
 0x24e   : > { %v906_v22 = vpop.permute.xlu1 %905  ;;  %v1189_v57 = vpop.permute.xlu0 %1188 }
 0x24f   : > { %v1546_v4 = vsel %vm1520_vm10, %v1513_v34, %v1189_v57  ;;  %v1448_v12 = vsel %vm1421_vm7, %v1415_v36, %v906_v22 }
 0x252   : > { %v1280_v3 = vpop.permute.xlu1 %1279  ;;  %v908_v5 = vpop.permute.xlu0 %907 }
 0x253   : > { %v1578_v15 = vsel %vm1553_vm11, %v1545_v41, %v1280_v3  ;;  %v1449_v53 = vsel %vm1421_vm7, %v1416_v14, %v908_v5 }
 0x254   : > { %2413 = vmatprep.mubr.msk.f32.mxu1 %vm1591_vm12, %v1578_v15 }
 0x256   : > { %v1002_v39 = vpop.permute.xlu1 %1001  ;;  %v1282_v50 = vpop.permute.xlu0 %1281 }
 0x257   : > { %v1579_v21 = vsel %vm1553_vm11, %v1546_v4, %v1282_v50  ;;  %v1481_v26 = vsel %vm1454_vm8, %v1448_v12, %v1002_v39  ;;  %v4905_v50 = vld [vmem:[#allocation90_spill] sm:$0xff] }
 0x258   : > { %v2379_v23 = vpop.f32.mrb[0].mxu0  ;;  %2414 = vmatmul.mubr.msk.f32.gmra.mrb[8].mxu1 %vm1591_vm12, %v1579_v21  ;;  %v1352_v21 = vsel %vm1324_vm4, %v4819_v17, %v4905_v50 }
 0x259   : > { %v1984_v33 = vsel %vm1356_vm5, %v2379_v23, 0.0  ;;  %v2053_v24 = vmul.f32 %v2379_v23, %v2379_v23  ;;  %v1758_v63 = vpop.f32.mrb[1].mxu0 }
 0x25a   : > { %v1983_v49 = vsel %vm1356_vm5, %v1758_v63, 0.0  ;;  %v2052_v1 = vmul.f32 %v1758_v63, %v1758_v63  ;;  %1917 = vxpose.xlu1.b32.start [1/16] (narrow) %v1758_v63, 8  ;;  %v1004_v40 = vpop.permute.xlu1 %1003  ;;  %v1098_v16 = vpop.permute.xlu0 %1097 }
 0x25b   : > { %v2085_v0 = vsel %vm1356_vm5, %v2053_v24, 0.0  ;;  %v1985_v62 = vadd.f32 %v1984_v33, %v1983_v49  ;;  %v1514_v31 = vsel %vm1487_vm9, %v1481_v26, %v1098_v16  ;;  %v1482_v58 = vsel %vm1454_vm8, %v1449_v53, %v1004_v40  ;;  %v4907_v24 = vld [vmem:[#allocation128_spill] sm:$0xff]  ;;  %v4908_v40 = vld [vmem:[#allocation91_spill] sm:$0xff]  ;;  %v4911_v53 = vld [vmem:[#allocation93_spill] sm:$0xff] }
 0x25c   : > { %v2084_v25 = vsel %vm1356_vm5, %v2052_v1, 0.0  ;;  %v1353_v16 = vsel %vm1324_vm4, %v4821_v8, %v4908_v40 }
 0x25d   : > { %v2086_v46 = vadd.f32 %v2085_v0, %v2084_v25 }
 0x25e   : > { %1918 = vxpose.xlu1.b32.cont [2/16] (narrow) %v2379_v23, 8  ;;  %v1100_v37 = vpop.permute.xlu1 %1099  ;;  %v1191_v38 = vpop.permute.xlu0 %1190  ;;  %v4906_v23 = vld [vmem:[#allocation111_spill] sm:$0xff] }
 0x25f   : > { %v1547_v7 = vsel %vm1520_vm10, %v1514_v31, %v1191_v38  ;;  %v1515_v22 = vsel %vm1487_vm9, %v1482_v58, %v1100_v37  ;;  %v1384_v33 = vsel %vm1356_vm5, %v1352_v21, %v4906_v23  ;;  %v4910_v37 = vld [vmem:[#allocation129_spill] sm:$0xff] }
 0x260   : > { %v1417_v63 = vsel %vm1388_vm6, %v1384_v33, %v4907_v24 }
 0x262   : > { %v910_v18 = vpop.permute.xlu1 %909  ;;  %v1193_v48 = vpop.permute.xlu0 %1192 }
 0x263   : > { %v1548_v54 = vsel %vm1520_vm10, %v1515_v22, %v1193_v48  ;;  %v1450_v0 = vsel %vm1421_vm7, %v1417_v63, %v910_v18  ;;  %v4912_v22 = vld [vmem:[#allocation114_spill] sm:$0xff] }
 0x266   : > { %v1284_v51 = vpop.permute.xlu1 %1283  ;;  %v912_v47 = vpop.permute.xlu0 %911 }
 0x267   : > { %v1580_v10 = vsel %vm1553_vm11, %v1547_v7, %v1284_v51 }
 0x268   : > { %v2382_v60 = vpop.f32.mrb[2].mxu0  ;;  %2416 = vmatprep.mubr.msk.f32.mxu1 %vm1591_vm12, %v1580_v10  ;;  %v1355_v10 = vsel %vm1324_vm4, %v4832_v28, %v4911_v53 }
 0x269   : > { %v1768_v57 = vpop.f32.mrb[3].mxu0  ;;  %v2055_v20 = vmul.f32 %v2382_v60, %v2382_v60  ;;  %v1988_v2 = vsel %vm1356_vm5, %v2382_v60, 0.0 }
 0x26a   : > { %v1986_v27 = vsel %vm1356_vm5, %v1768_v57, 0.0  ;;  %v2054_v9 = vmul.f32 %v1768_v57, %v1768_v57  ;;  %1919 = vxpose.xlu1.b32.cont [3/16] (narrow) %v1768_v57, 8  ;;  %v1006_v13 = vpop.permute.xlu1 %1005  ;;  %v1286_v52 = vpop.permute.xlu0 %1285  ;;  %v1387_v57 = vsel %vm1356_vm5, %v1355_v10, %v4912_v22 }
 0x26b   : > { %v1987_v42 = vadd.f32 %v1986_v27, %v1985_v62  ;;  %v1581_v11 = vsel %vm1553_vm11, %v1548_v54, %v1286_v52  ;;  %v2089_v19 = vsel %vm1356_vm5, %v2055_v20, 0.0  ;;  %v4909_v62 = vld [vmem:[#allocation112_spill] sm:$0xff]  ;;  %v4914_v27 = vld [vmem:[#allocation131_spill] sm:$0xff] }
 0x26c   : > { %v2087_v41 = vsel %vm1356_vm5, %v2054_v9, 0.0  ;;  %2417 = vmatmul.mubr.msk.f32.gmra.mrb[10].mxu1 %vm1591_vm12, %v1581_v11  ;;  %v1385_v25 = vsel %vm1356_vm5, %v1353_v16, %v4909_v62  ;;  %v4913_v54 = vld [vmem:[#allocation92_spill] sm:$0xff]  ;;  %v1420_v9 = vsel %vm1388_vm6, %v1387_v57, %v4914_v27 }
 0x26d   : > { %v2088_v3 = vadd.f32 %v2087_v41, %v2086_v46  ;;  %v1989_v5 = vadd.f32 %v1988_v2, %v1987_v42  ;;  %v1483_v46 = vsel %vm1454_vm8, %v1450_v0, %v1006_v13  ;;  %v1418_v38 = vsel %vm1388_vm6, %v1385_v25, %v4910_v37  ;;  %v4915_v13 = vld [vmem:[#allocation113_spill] sm:$0xff]  ;;  %v4916_v2 = vld [vmem:[#allocation130_spill] sm:$0xff] }
 0x26e   : > { %1920 = vxpose.xlu1.b32.cont [4/16] (narrow) %v2382_v60, 8  ;;  %v1008_v15 = vpop.permute.xlu1 %1007  ;;  %v1102_v32 = vpop.permute.xlu0 %1101  ;;  %v1451_v48 = vsel %vm1421_vm7, %v1418_v38, %v912_v47  ;;  %v1354_v20 = vsel %vm1324_vm4, %v4829_v44, %v4913_v54 }
 0x26f   : > { %v2090_v34 = vadd.f32 %v2089_v19, %v2088_v3  ;;  %v1516_v45 = vsel %vm1487_vm9, %v1483_v46, %v1102_v32  ;;  %v1484_v6 = vsel %vm1454_vm8, %v1451_v48, %v1008_v15  ;;  %v1386_v52 = vsel %vm1356_vm5, %v1354_v20, %v4915_v13 }
 0x270   : > { %v1419_v41 = vsel %vm1388_vm6, %v1386_v52, %v4916_v2 }
 0x272   : > { %v1104_v4 = vpop.permute.xlu1 %1103  ;;  %v1195_v39 = vpop.permute.xlu0 %1194 }
 0x273   : > { %v1549_v43 = vsel %vm1520_vm10, %v1516_v45, %v1195_v39  ;;  %v1517_v59 = vsel %vm1487_vm9, %v1484_v6, %v1104_v4 }
 0x276   : > { %v914_v49 = vpop.permute.xlu1 %913  ;;  %v1197_v1 = vpop.permute.xlu0 %1196 }
 0x277   : > { %v1550_v14 = vsel %vm1520_vm10, %v1517_v59, %v1197_v1 }
 0x278   : > { %v2385_v17 = vpop.f32.mrb[4].mxu0 }
 0x279   : > { %v1778_v55 = vpop.f32.mrb[5].mxu0  ;;  %v2057_v30 = vmul.f32 %v2385_v17, %v2385_v17  ;;  %v1992_v26 = vsel %vm1356_vm5, %v2385_v17, 0.0 }
 0x27a   : > { %v1990_v61 = vsel %vm1356_vm5, %v1778_v55, 0.0  ;;  %v2056_v8 = vmul.f32 %v1778_v55, %v1778_v55  ;;  %1921 = vxpose.xlu1.b32.cont [5/16] (narrow) %v1778_v55, 8  ;;  %v1288_v36 = vpop.permute.xlu1 %1287  ;;  %v916_v18 = vpop.permute.xlu0 %915 }
 0x27b   : > { %v1991_v12 = vadd.f32 %v1990_v61, %v1989_v5  ;;  %v1582_v56 = vsel %vm1553_vm11, %v1549_v43, %v1288_v36  ;;  %v2093_v7 = vsel %vm1356_vm5, %v2057_v30, 0.0  ;;  %v1453_v28 = vsel %vm1421_vm7, %v1420_v9, %v916_v18 }
 0x27c   : > { %v2091_v35 = vsel %vm1356_vm5, %v2056_v8, 0.0  ;;  %2419 = vmatprep.mubr.msk.f32.mxu1 %vm1591_vm12, %v1582_v56  ;;  %v1452_v5 = vsel %vm1421_vm7, %v1419_v41, %v914_v49 }
 0x27d   : > { %v2092_v31 = vadd.f32 %v2091_v35, %v2090_v34  ;;  %v1993_v29 = vadd.f32 %v1992_v26, %v1991_v12 }
 0x27e   : > { %1922 = vxpose.xlu1.b32.cont [6/16] (narrow) %v2385_v17, 8  ;;  %v1010_v51 = vpop.permute.xlu1 %1009  ;;  %v1290_v47 = vpop.permute.xlu0 %1289 }
 0x27f   : > { %v1583_v58 = vsel %vm1553_vm11, %v1550_v14, %v1290_v47  ;;  %v2094_v60 = vadd.f32 %v2093_v7, %v2092_v31  ;;  %v1485_v19 = vsel %vm1454_vm8, %v1452_v5, %v1010_v51 }
 0x280   : > { %2420 = vmatmul.mubr.msk.f32.gmra.mrb[12].mxu1 %vm1591_vm12, %v1583_v58 }
 0x282   : > { %v1012_v42 = vpop.permute.xlu1 %1011  ;;  %v1106_v11 = vpop.permute.xlu0 %1105 }
 0x283   : > { %v1486_v3 = vsel %vm1454_vm8, %v1453_v28, %v1012_v42  ;;  %v1518_v44 = vsel %vm1487_vm9, %v1485_v19, %v1106_v11 }
 0x284   : > { %v1519_v15 = vsel %vm1487_vm9, %v1486_v3, %v1106_v11 }
 0x286   : > { %v1199_v32 = vpop.permute.xlu1 %1198 }
 0x287   : > { %v1551_v34 = vsel %vm1520_vm10, %v1518_v44, %v1199_v32  ;;  %v1552_v4 = vsel %vm1520_vm10, %v1519_v15, %v1199_v32  ;;  %v1292_v39 = vpop.permute.xlu0 %1291 }
 0x288   : > { %v1584_v50 = vsel %vm1553_vm11, %v1551_v34, %v1292_v39  ;;  %v1585_v21 = vsel %vm1553_vm11, %v1552_v4, %v1292_v39 }
 0x289   : > { %2422 = vmatprep.mubr.msk.f32.mxu1 %vm1591_vm12, %v1584_v50 }
 0x28a   : > { %2423 = vmatmul.mubr.msk.f32.gmra.mrb[14].mxu1 %vm1591_vm12, %v1585_v21 }
 0x290   : > { %v2388_v23 = vpop.f32.mrb[6].mxu0 }
 0x291   : > { %v1788_v33 = vpop.f32.mrb[7].mxu0  ;;  %v2059_v24 = vmul.f32 %v2388_v23, %v2388_v23  ;;  %v1996_v40 = vsel %vm1356_vm5, %v2388_v23, 0.0 }
 0x292   : > { %v1994_v63 = vsel %vm1356_vm5, %v1788_v33, 0.0  ;;  %v2058_v49 = vmul.f32 %v1788_v33, %v1788_v33  ;;  %1923 = vxpose.xlu1.b32.cont [7/16] (narrow) %v1788_v33, 8 }
 0x293   : > { %v1995_v1 = vadd.f32 %v1994_v63, %v1993_v29  ;;  %v2097_v25 = vsel %vm1356_vm5, %v2059_v24, 0.0 }
 0x294   : > { %v2095_v16 = vsel %vm1356_vm5, %v2058_v49, 0.0 }
 0x295   : > { %v2096_v0 = vadd.f32 %v2095_v16, %v2094_v60  ;;  %v1997_v62 = vadd.f32 %v1996_v40, %v1995_v1 }
 0x296   : > { %1924 = vxpose.xlu1.b32.cont [8/16] (narrow) %v2388_v23, 8 }
 0x297   : > { %v2098_v46 = vadd.f32 %v2097_v25, %v2096_v0 }
 0x2ac   : > { %v4346_v17 = vpop.f32.mrb[0].mxu1 }
 0x2ad   : > { %v4348_v37 = vpop.f32.mrb[1].mxu1  ;;  %v2069_v63 = vmul.f32 %v4346_v17, %v4346_v17  ;;  %v2016_v0 = vsel %vm1356_vm5, %v4346_v17, 0.0 }
 0x2ae   : > { %1949 = vxpose.xlu0.b32.start [1/16] (narrow) %v4348_v37, 8  ;;  %v2068_v50 = vmul.f32 %v4348_v37, %v4348_v37  ;;  %v2014_v49 = vsel %vm1356_vm5, %v4348_v37, 0.0 }
 0x2b2   : > { %1950 = vxpose.xlu0.b32.cont [2/16] (narrow) %v4346_v17, 8 }
 0x2b4   : > { %v2391_v38 = vpop.f32.mrb[8].mxu0 }
 0x2b5   : > { %v1798_v45 = vpop.f32.mrb[9].mxu0  ;;  %v2061_v55 = vmul.f32 %v2391_v38, %v2391_v38  ;;  %v2000_v8 = vsel %vm1356_vm5, %v2391_v38, 0.0 }
 0x2b6   : > { %v1998_v43 = vsel %vm1356_vm5, %v1798_v45, 0.0  ;;  %v2060_v30 = vmul.f32 %v1798_v45, %v1798_v45  ;;  %1925 = vxpose.xlu1.b32.cont [9/16] (narrow) %v1798_v45, 8  ;;  %v2117_v45 = vsel %vm1356_vm5, %v2069_v63, 0.0 }
 0x2b7   : > { %v1999_v61 = vadd.f32 %v1998_v43, %v1997_v62  ;;  %v2101_v12 = vsel %vm1356_vm5, %v2061_v55, 0.0  ;;  %v2115_v62 = vsel %vm1356_vm5, %v2068_v50, 0.0 }
 0x2b8   : > { %v2099_v36 = vsel %vm1356_vm5, %v2060_v30, 0.0 }
 0x2b9   : > { %v2100_v18 = vadd.f32 %v2099_v36, %v2098_v46  ;;  %v2001_v48 = vadd.f32 %v2000_v8, %v1999_v61 }
 0x2ba   : > { %1926 = vxpose.xlu1.b32.cont [10/16] (narrow) %v2391_v38, 8 }
 0x2bb   : > { %v2102_v56 = vadd.f32 %v2101_v12, %v2100_v18 }
 0x2d0   : > { %v4356_v6 = vpop.f32.mrb[2].mxu1 }
 0x2d1   : > { %v4358_v26 = vpop.f32.mrb[3].mxu1  ;;  %v2071_v37 = vmul.f32 %v4356_v6, %v4356_v6  ;;  %v2020_v17 = vsel %vm1356_vm5, %v4356_v6, 0.0 }
 0x2d2   : > { %1951 = vxpose.xlu0.b32.cont [3/16] (narrow) %v4358_v26, 8  ;;  %v2070_v25 = vmul.f32 %v4358_v26, %v4358_v26  ;;  %v2018_v55 = vsel %vm1356_vm5, %v4358_v26, 0.0 }
 0x2d4   : > { %v2119_v61 = vsel %vm1356_vm5, %v2070_v25, 0.0 }
 0x2d6   : > { %1952 = vxpose.xlu0.b32.cont [4/16] (narrow) %v4356_v6, 8 }
 0x2d8   : > { %v2394_v35 = vpop.f32.mrb[10].mxu0 }
 0x2d9   : > { %v1808_v59 = vpop.f32.mrb[11].mxu0  ;;  %v2063_v31 = vmul.f32 %v2394_v35, %v2394_v35  ;;  %v2004_v51 = vsel %vm1356_vm5, %v2394_v35, 0.0 }
 0x2da   : > { %v2002_v29 = vsel %vm1356_vm5, %v1808_v59, 0.0  ;;  %v2062_v14 = vmul.f32 %v1808_v59, %v1808_v59  ;;  %1927 = vxpose.xlu1.b32.cont [11/16] (narrow) %v1808_v59, 8 }
 0x2db   : > { %v2003_v7 = vadd.f32 %v2002_v29, %v2001_v48  ;;  %v2105_v58 = vsel %vm1356_vm5, %v2063_v31, 0.0  ;;  %v2121_v48 = vsel %vm1356_vm5, %v2071_v37, 0.0 }
 0x2dc   : > { %v2103_v47 = vsel %vm1356_vm5, %v2062_v14, 0.0 }
 0x2dd   : > { %v2104_v53 = vadd.f32 %v2103_v47, %v2102_v56  ;;  %v2005_v10 = vadd.f32 %v2004_v51, %v2003_v7 }
 0x2de   : > { %1928 = vxpose.xlu1.b32.cont [12/16] (narrow) %v2394_v35, 8 }
 0x2df   : > { %v2106_v60 = vadd.f32 %v2105_v58, %v2104_v53 }
 0x2f3   : > { %v2409_v22 = vpop.f32.mrb[4].mxu1 }
 0x2f4   : > { %v1858_v57 = vpop.f32.mrb[5].mxu1  ;;  %v2073_v12 = vmul.f32 %v2409_v22, %v2409_v22  ;;  %v2024_v31 = vsel %vm1356_vm5, %v2409_v22, 0.0 }
 0x2f5   : > { %1953 = vxpose.xlu0.b32.cont [5/16] (narrow) %v1858_v57, 8  ;;  %v2072_v8 = vmul.f32 %v1858_v57, %v1858_v57  ;;  %v2022_v56 = vsel %vm1356_vm5, %v1858_v57, 0.0 }
 0x2f6   : > { %v2125_v47 = vsel %vm1356_vm5, %v2073_v12, 0.0 }
 0x2f7   : > { %v2123_v26 = vsel %vm1356_vm5, %v2072_v8, 0.0 }
 0x2f9   : > { %1954 = vxpose.xlu0.b32.cont [6/16] (narrow) %v2409_v22, 8 }
 0x2fb   : > { %v2397_v54 = vpop.f32.mrb[12].mxu0 }
 0x2fc   : > { %v1818_v20 = vpop.f32.mrb[13].mxu0  ;;  %v2065_v27 = vmul.f32 %v2397_v54, %v2397_v54  ;;  %v2008_v28 = vsel %vm1356_vm5, %v2397_v54, 0.0 }
 0x2fd   : > { %v2006_v9 = vsel %vm1356_vm5, %v1818_v20, 0.0  ;;  %v2064_v13 = vmul.f32 %v1818_v20, %v1818_v20  ;;  %1929 = vxpose.xlu1.b32.cont [13/16] (narrow) %v1818_v20, 8 }
 0x2fe   : > { %v2007_v52 = vadd.f32 %v2006_v9, %v2005_v10  ;;  %v2109_v41 = vsel %vm1356_vm5, %v2065_v27, 0.0 }
 0x2ff   : > { %v2107_v42 = vsel %vm1356_vm5, %v2064_v13, 0.0 }
 0x300   : > { %v2108_v11 = vadd.f32 %v2107_v42, %v2106_v60  ;;  %v2009_v2 = vadd.f32 %v2008_v28, %v2007_v52 }
 0x301   : > { %1930 = vxpose.xlu1.b32.cont [14/16] (narrow) %v2397_v54, 8 }
 0x302   : > { %v2110_v3 = vadd.f32 %v2109_v41, %v2108_v11 }
 0x317   : > { %v2412_v5 = vpop.f32.mrb[6].mxu1 }
 0x318   : > { %v1868_v19 = vpop.f32.mrb[7].mxu1  ;;  %v2075_v53 = vmul.f32 %v2412_v5, %v2412_v5  ;;  %v2028_v57 = vsel %vm1356_vm5, %v2412_v5, 0.0 }
 0x319   : > { %1955 = vxpose.xlu0.b32.cont [7/16] (narrow) %v1868_v19, 8  ;;  %v2074_v29 = vmul.f32 %v1868_v19, %v1868_v19  ;;  %v2026_v10 = vsel %vm1356_vm5, %v1868_v19, 0.0 }
 0x31a   : > { %v2129_v9 = vsel %vm1356_vm5, %v2075_v53, 0.0 }
 0x31b   : > { %v2400_v44 = vpop.f32.mrb[14].mxu0  ;;  %v2127_v54 = vsel %vm1356_vm5, %v2074_v29, 0.0 }
 0x31c   : > { %v1828_v15 = vpop.f32.mrb[15].mxu0  ;;  %v2067_v32 = vmul.f32 %v2400_v44, %v2400_v44  ;;  %v2012_v21 = vsel %vm1356_vm5, %v2400_v44, 0.0 }
 0x31d   : > { %v2010_v34 = vsel %vm1356_vm5, %v1828_v15, 0.0  ;;  %v2066_v4 = vmul.f32 %v1828_v15, %v1828_v15  ;;  %1956 = vxpose.xlu0.b32.cont [8/16] (narrow) %v2412_v5, 8  ;;  %1931 = vxpose.xlu1.b32.cont [15/16] (narrow) %v1828_v15, 8 }
 0x31e   : > { %v2011_v39 = vadd.f32 %v2010_v34, %v2009_v2  ;;  %v2113_v1 = vsel %vm1356_vm5, %v2067_v32, 0.0 }
 0x31f   : > { %v2111_v23 = vsel %vm1356_vm5, %v2066_v4, 0.0 }
 0x320   : > { %v2013_v33 = vadd.f32 %v2012_v21, %v2011_v39  ;;  %v2112_v24 = vadd.f32 %v2111_v23, %v2110_v3 }
 0x321   : > { %1932 = vxpose.xlu1.b32.end [16/16] (narrow) %v2400_v44, 8 }
 0x322   : > { %v2015_v40 = vadd.f32 %v2014_v49, %v2013_v33  ;;  %v2114_v16 = vadd.f32 %v2113_v1, %v2112_v24 }
 0x324   : > { %v2017_v46 = vadd.f32 %v2016_v0, %v2015_v40  ;;  %v2116_v38 = vadd.f32 %v2115_v62, %v2114_v16 }
 0x326   : > { %v2019_v43 = vadd.f32 %v2018_v55, %v2017_v46  ;;  %v2118_v30 = vadd.f32 %v2117_v45, %v2116_v38 }
 0x328   : > { %v2021_v36 = vadd.f32 %v2020_v17, %v2019_v43  ;;  %v2120_v18 = vadd.f32 %v2119_v61, %v2118_v30 }
 0x32a   : > { %v2122_v35 = vadd.f32 %v2121_v48, %v2120_v18  ;;  %v2023_v59 = vadd.f32 %v2022_v56, %v2021_v36 }
 0x32b   : > { %v2415_v14 = vpop.f32.mrb[8].mxu1 }
 0x32c   : > { %v1878_v7 = vpop.f32.mrb[9].mxu1  ;;  %v2025_v6 = vadd.f32 %v2024_v31, %v2023_v59  ;;  %v2124_v51 = vadd.f32 %v2123_v26, %v2122_v35  ;;  %v2077_v13 = vmul.f32 %v2415_v14, %v2415_v14  ;;  %v2032_v11 = vsel %vm1356_vm5, %v2415_v14, 0.0 }
 0x32d   : > { %1957 = vxpose.xlu0.b32.cont [9/16] (narrow) %v1878_v7, 8  ;;  %v2076_v22 = vmul.f32 %v1878_v7, %v1878_v7  ;;  %v2030_v52 = vsel %vm1356_vm5, %v1878_v7, 0.0 }
 0x32e   : > { %v2027_v58 = vadd.f32 %v2026_v10, %v2025_v6  ;;  %v2126_v60 = vadd.f32 %v2125_v47, %v2124_v51  ;;  %v2133_v5 = vsel %vm1356_vm5, %v2077_v13, 0.0 }
 0x32f   : > { %v2131_v2 = vsel %vm1356_vm5, %v2076_v22, 0.0 }
 0x330   : > { %v2029_v20 = vadd.f32 %v2028_v57, %v2027_v58  ;;  %v2128_v27 = vadd.f32 %v2127_v54, %v2126_v60 }
 0x331   : > { %1958 = vxpose.xlu0.b32.cont [10/16] (narrow) %v2415_v14, 8 }
 0x332   : > { %v2031_v28 = vadd.f32 %v2030_v52, %v2029_v20  ;;  %v2130_v42 = vadd.f32 %v2129_v9, %v2128_v27 }
 0x334   : > { %v2132_v41 = vadd.f32 %v2131_v2, %v2130_v42  ;;  %v2033_v3 = vadd.f32 %v2032_v11, %v2031_v28 }
 0x336   : > { %v2134_v19 = vadd.f32 %v2133_v5, %v2132_v41 }
 0x33f   : > { %v2418_v44 = vpop.f32.mrb[10].mxu1 }
 0x340   : > { %v1888_v15 = vpop.f32.mrb[11].mxu1  ;;  %v2079_v32 = vmul.f32 %v2418_v44, %v2418_v44  ;;  %v2036_v50 = vsel %vm1356_vm5, %v2418_v44, 0.0 }
 0x341   : > { %v2034_v34 = vsel %vm1356_vm5, %v1888_v15, 0.0  ;;  %v2078_v4 = vmul.f32 %v1888_v15, %v1888_v15  ;;  %1959 = vxpose.xlu0.b32.cont [11/16] (narrow) %v1888_v15, 8 }
 0x342   : > { %v2035_v39 = vadd.f32 %v2034_v34, %v2033_v3  ;;  %v2137_v24 = vsel %vm1356_vm5, %v2079_v32, 0.0 }
 0x343   : > { %v2135_v21 = vsel %vm1356_vm5, %v2078_v4, 0.0 }
 0x344   : > { %v2136_v23 = vadd.f32 %v2135_v21, %v2134_v19  ;;  %v2037_v33 = vadd.f32 %v2036_v50, %v2035_v39 }
 0x345   : > { %1960 = vxpose.xlu0.b32.cont [12/16] (narrow) %v2418_v44, 8 }
 0x346   : > { %v2138_v63 = vadd.f32 %v2137_v24, %v2136_v23 }
 0x353   : > { %v2421_v49 = vpop.f32.mrb[12].mxu1 }
 0x354   : > { %v1898_v1 = vpop.f32.mrb[13].mxu1  ;;  %v2081_v40 = vmul.f32 %v2421_v49, %v2421_v49  ;;  %v2040_v25 = vsel %vm1356_vm5, %v2421_v49, 0.0 }
 0x355   : > { %v2038_v16 = vsel %vm1356_vm5, %v1898_v1, 0.0  ;;  %v2080_v0 = vmul.f32 %v1898_v1, %v1898_v1  ;;  %1961 = vxpose.xlu0.b32.cont [13/16] (narrow) %v1898_v1, 8 }
 0x356   : > { %v2039_v62 = vadd.f32 %v2038_v16, %v2037_v33  ;;  %v2141_v37 = vsel %vm1356_vm5, %v2081_v40, 0.0 }
 0x357   : > { %v2139_v46 = vsel %vm1356_vm5, %v2080_v0, 0.0 }
 0x358   : > { %v2140_v38 = vadd.f32 %v2139_v46, %v2138_v63  ;;  %v2041_v45 = vadd.f32 %v2040_v25, %v2039_v62 }
 0x359   : > { %1962 = vxpose.xlu0.b32.cont [14/16] (narrow) %v2421_v49, 8 }
 0x35a   : > { %v2142_v55 = vadd.f32 %v2141_v37, %v2140_v38 }
 0x35d   : > { %v2424_v43 = vpop.f32.mrb[14].mxu1 }
 0x35e   : > { %v1908_v30 = vpop.f32.mrb[15].mxu1  ;;  %v2083_v17 = vmul.f32 %v2424_v43, %v2424_v43  ;;  %v2044_v18 = vsel %vm1356_vm5, %v2424_v43, 0.0 }
 0x35f   : > { %v2042_v61 = vsel %vm1356_vm5, %v1908_v30, 0.0  ;;  %v2082_v8 = vmul.f32 %v1908_v30, %v1908_v30  ;;  %1963 = vxpose.xlu0.b32.cont [15/16] (narrow) %v1908_v30, 8 }
 0x360   : > { %v2043_v36 = vadd.f32 %v2042_v61, %v2041_v45  ;;  %v2145_v35 = vsel %vm1356_vm5, %v2083_v17, 0.0 }
 0x361   : > { %v2143_v48 = vsel %vm1356_vm5, %v2082_v8, 0.0 }
 0x362   : > { %v2045_v12 = vadd.f32 %v2044_v18, %v2043_v36  ;;  %v2144_v56 = vadd.f32 %v2143_v48, %v2142_v55 }
 0x363   : > { %1964 = vxpose.xlu0.b32.end [16/16] (narrow) %v2424_v43, 8 }
 0x364   : > { %v2046_v59 = vrot.slane %v2045_v12, 4  ;;  %v2146_v31 = vadd.f32 %v2145_v35, %v2144_v56 }
 0x365   : > { %v1933_v26 = vpop.trf.xlu1 }
 0x366   : > { %v2047_v29 = vadd.f32 %v2046_v59, %v2045_v12  ;;  %v2147_v14 = vrot.slane %v2146_v31, 4  ;;  %1981 = vst [vmem:[%s4422_s4] sm:$0xff] %v1933_v26 }
 0x368   : > { %v2048_v7 = vrot.slane %v2047_v29, 2  ;;  %v2148_v6 = vadd.f32 %v2147_v14, %v2146_v31 }
 0x36a   : > { %v2049_v51 = vadd.f32 %v2048_v7, %v2047_v29  ;;  %v2149_v47 = vrot.slane %v2148_v6, 2 }
 0x36c   : > { %v2050_v53 = vrot.slane %v2049_v51, 1  ;;  %v2150_v10 = vadd.f32 %v2149_v47, %v2148_v6 }
 0x36e   : > { %v2151_v58 = vrot.slane %v2150_v10, 1  ;;  %v2051_v60 = vadd.f32 %v2050_v53, %v2049_v51 }
 0x370   : > { %v2152_v57 = vadd.f32 %v2151_v58, %v2150_v10 }
 0x372   : > { %v2153_v54 = vsel %vm244_vm0, %v2051_v60, %v2152_v57 }
 0x373   : > { %2155 = vst.msk [vmem:[%s174_s7] sm:$0x3] %vm2154_vm13, %v2153_v54 }
 0x374   : > { %2505 = shalt.err (!%p2502_p3)
}
 0x375   : > { %s2506_s26 = scalar_lea.hbm %s4430_s11, 32  ;;  %s2510_s30 = scalar_lea.hbm %s4509_s3, 64 }
 0x376   : > { %p2507_p4 = scmp.ne.s32.totalorder %s4430_s11, %s2506_s26  ;;  %p2511_p9 = scmp.lt.u32.totalorder %s4430_s11, %s4509_s3 }
 0x377   : > { %p2512_p10 = scmp.lt.u32.totalorder %s2510_s30, %s2506_s26  ;;  %p2514_p12 = scmp.lt.u32.totalorder %s2506_s26, %s4430_s11 }
 0x378   : > { %p2508_p7 = pnand %p2507_p4, %p2657_p5 }
 0x379   : > { %p2513_p11 = por %p2512_p10, %p2511_p9 }
 0x37a   : > { %p2509_p8 = pneg %p2508_p7 }
 0x37b   : > { %p2515_p13 = por %p2514_p12, %p2513_p11 }
 0x37d   : > { %p2516_p0 = pnand %p2515_p13, %p2509_p8 }
 0x37f   : > { %2519 = shalt.err (!%p2516_p0)
}
 0x380   : > { %2440 = dma.vmem_to_hbm [thread:$0]  (%p2657_p5), %s4432_s8, 32, %s4430_s11, %s2162_s17  }
 0x381   : > { %s2176_s7 = sshll.u32 %s4422_s4, 4  ;;  %s2329_s9 = sshll.u32 %s2640_s16, 8  ;;  %s4459_s7 = int_to_ptr.vmem [resolvable:$true] %s2176_s7 }
 0x382   : > { %s4464_s20 = scalar_lea.hbm %s4508_s2, %s2329_s9  ;;  %s2157_s24 = scalar_lea.sflag [#allocation3], %s4416_s29 }
 0x383   : > { %s2520_s25 = scalar_lea.vmem %s4459_s7, 256  ;;  %s2598_s8 = smov [#allocation2]  }
 0x384   : > { %p2521_p1 = scmp.ne.s32.totalorder %s4459_s7, %s2520_s25  ;;  %s2524_s16 = sshll.u32 %s2598_s8, 4  ;;  %s2525_s16 = int_to_ptr.vmem [resolvable:$false] %s2524_s16 }
 0x385   : > { %s2526_s11 = scalar_lea.vmem %s2525_s16, 512  ;;  %p2527_p4 = scmp.lt.s32.totalorder %s4459_s7, %s2525_s16 }
 0x386   : > { %p2522_p2 = pnand %p2521_p1, %p2657_p5  ;;  %p2528_p7 = scmp.lt.s32.totalorder %s2526_s11, %s2520_s25 }
 0x388   : > { %p2523_p3 = pneg %p2522_p2  ;;  %p2529_p8 = por %p2528_p7, %p2527_p4 }
 0x38a   : > { %p2530_p9 = pnand %p2529_p8, %p2523_p3 }
 0x3a7   : > { %v1965_v22 = vpop.trf.xlu0 }
 0x3a8   : > { %1982 = vst [vmem:[%s4422_s4 + $0x8] sm:$0xff] %v1965_v22 }
 0x3a9   : > { %2533 = shalt.err (!%p2530_p9)
}
 0x3aa   : > { %s2534_s29 = scalar_lea.hbm %s4464_s20, 256  ;;  %s2538_s26 = scalar_lea.hbm %s4508_s2, 512 }
 0x3ab   : > { %p2535_p10 = scmp.ne.s32.totalorder %s4464_s20, %s2534_s29  ;;  %p2539_p13 = scmp.lt.u32.totalorder %s4464_s20, %s4508_s2 }
 0x3ac   : > { %p2540_p0 = scmp.lt.u32.totalorder %s2538_s26, %s2534_s29  ;;  %p2542_p2 = scmp.lt.u32.totalorder %s2534_s29, %s4464_s20 }
 0x3ad   : > { %p2536_p11 = pnand %p2535_p10, %p2657_p5 }
 0x3ae   : > { %p2541_p1 = por %p2540_p0, %p2539_p13 }
 0x3af   : > { %p2537_p12 = pneg %p2536_p11 }
 0x3b0   : > { %p2543_p3 = por %p2542_p2, %p2541_p1 }
 0x3b2   : > { %p2544_p4 = pnand %p2543_p3, %p2537_p12 }
 0x3b4   : > { %2547 = shalt.err (!%p2544_p4)
}
 0x3b5   : > { %2439 = dma.vmem_to_hbm [thread:$0]  (%p2657_p5), %s4459_s7, 256, %s4464_s20, %s2157_s24  }
 0x3b6 PF: > { %p2450_p7 = scmp.ge.s32.totalorder %s2586_s15, 2  ;;  %s2201_s30 = sand.u32 1, %s2574_s12  }
 0x3b7   : > { %s2202_s5 = scalar_lea.sflag [#allocation3], %s2201_s30 }
 0x3b8   : > { %p2444_p8 = pnand %p2450_p7, %p2661_p6 }
 0x3ba   : > { %2565 = dma.done.wait (!%p2444_p8), %s2202_s5, 256  }
 0x3bb   : > { %2567 = vsyncadd (!%p2444_p8), %s2202_s5, 4294967040  ;;  %s2211_s6 = scalar_lea.sflag [#allocation5], %s2201_s30 }
 0x3bc   : > { %2569 = dma.done.wait (!%p2444_p8), %s2211_s6, 32  }
 0x3bd   : > { %2571 = vsyncadd (!%p2444_p8), %s2211_s6, 4294967264  ;;  %p17_p5 = scmp.ge.s32.totalorder %s2644_s18, 4   ;;  %s4917_s12 = smov %s2578_s13 }
 0x3be   : > { %s4918_s13 = smov %s2582_s14  ;;  %s4919_s14 = smov %s2655_s21 }
 0x3bf   : > { %s4920_s15 = smov %s2644_s18  ;;  %19 = sbr.rel (!%p17_p5) target bundleno = 5 (0x5), region = 80 }
 0x3c6   :  { %2216 = vsyncpa [#allocation3], 1 }
 0x3c7   :  { %2218 = vsyncpa [#allocation3 + $0x1], 1 }
 0x3c8   :  { %2219 = vsyncpa [#allocation5], 1 }
 0x3c9   :  { %2221 = vsyncpa [#allocation5 + $0x1], 1 }

</bundles_post_ra>
